<compile_context>
chip_gen: v7x
topology: tpu7x:2x2x1
jax: 0.10.0
libtpu: 0.0.40
codegen_flags: <defaults>
</compile_context>

<pallas_src>
import functools
import math

import jax
import jax.numpy as jnp
from jax.experimental import pallas as pl
from jax.experimental.pallas import tpu as pltpu

HIDDEN1_UNITS = 400
HIDDEN2_UNITS = 400
HIDDEN3_UNITS = 400


def _round_up(x, m):
    return ((x + m - 1) // m) * m


def _softplus(x):
    # numerically stable softplus: max(x, 0) + log1p(exp(-|x|))
    return jnp.maximum(x, 0.0) + jnp.log1p(jnp.exp(-jnp.abs(x)))


def penn_kernel(x_ref,
                w1_ref, b1_ref,
                w2_ref, b2_ref,
                w3_ref, b3_ref,
                w4_ref, b4_ref,
                maxlv_ref, minlv_ref,
                out_ref, *, state_dim):
    """One grid step = (ensemble member, batch tile).

    Weights are VMEM-resident across the inner batch-tile axis (their index_maps ignore
    it).  Layers 1-3 use bf16 weights / bf16 MXU inputs with f32 accumulation; all
    elementwise math (bias add, ReLU, softplus clamp) is f32.  Layer 4 is fully f32."""
    x = x_ref[...].astype(jnp.bfloat16)                               # (TB, D_in)

    h = jnp.dot(x, w1_ref[...], preferred_element_type=jnp.float32) + b1_ref[...]
    h = jnp.maximum(h, 0.0)

    h = jnp.dot(h.astype(jnp.bfloat16), w2_ref[...],
                preferred_element_type=jnp.float32) + b2_ref[...]
    h = jnp.maximum(h, 0.0)

    h = jnp.dot(h.astype(jnp.bfloat16), w3_ref[...],
                preferred_element_type=jnp.float32) + b3_ref[...]
    h = jnp.maximum(h, 0.0)

    # final layer in f32 (tiny N = 2*state_dim): removes most bf16 drift pre-clamp
    out = jnp.dot(h, w4_ref[...], preferred_element_type=jnp.float32) + b4_ref[...]

    # full-width logvar clamp, then lane-select mean vs logvar (no slice/concat)
    max_lv = maxlv_ref[...]                                           # (1, 2*state_dim)
    min_lv = minlv_ref[...]                                           # (1, 2*state_dim)
    lv = max_lv - _softplus(max_lv - out)
    lv = min_lv + _softplus(lv - min_lv)

    col = jax.lax.broadcasted_iota(jnp.int32, out.shape, dimension=1)
    out_ref[...] = jnp.where(col < state_dim, out, lv)


def penn_forward(x, params, max_logvar, min_logvar, *, batch_tile=512):
    """x: (B, state_dim + action_dim) float32.
    params: dict of stacked per-net weights (see prepare_params): w1..w3 bf16, w4 f32,
            biases f32, all at their real (unpadded) sizes.
    Returns (mean, logvar), each (num_nets, B, state_dim) float32."""
    w1, b1 = params["w1"], params["b1"]
    w2, b2 = params["w2"], params["b2"]
    w3, b3 = params["w3"], params["b3"]
    w4, b4 = params["w4"], params["b4"]

    num_nets = w1.shape[0]
    d_in = w1.shape[1]
    h1, h2, h3 = w1.shape[2], w2.shape[2], w3.shape[2]
    batch = x.shape[0]
    state_dim = max_logvar.shape[-1]
    out_dim = 2 * state_dim

    # broadcast clamp bounds to the fused output width (mean lanes masked away later)
    max_lv_full = jnp.tile(max_logvar.reshape(1, state_dim), (1, 2)).astype(jnp.float32)
    min_lv_full = jnp.tile(min_logvar.reshape(1, state_dim), (1, 2)).astype(jnp.float32)

    # adaptive, 16-aligned batch tile that bounds padding waste
    if batch <= batch_tile:
        n_bt = 1
        tb = _round_up(batch, 16)
    else:
        n_bt = math.ceil(batch / batch_tile)
        tb = _round_up(math.ceil(batch / n_bt), 16)
    b_pad = tb * n_bt
    if b_pad != batch:
        x = jnp.pad(x, ((0, b_pad - batch), (0, 0)))

    def net_spec(shape):
        # ensemble dim squeezed; index_map ignores the batch-tile axis so the weight
        # block stays resident in VMEM across batch tiles.
        return pl.BlockSpec((None,) + shape, lambda n, b: (n,) + (0,) * len(shape))

    def shared_spec(shape):
        return pl.BlockSpec(shape, lambda n, b: (0,) * len(shape))

    grid_spec = pl.GridSpec(
        grid=(num_nets, n_bt),  # batch-tile axis innermost (fastest)
        in_specs=[
            pl.BlockSpec((tb, d_in), lambda n, b: (b, 0)),   # x (shared across nets)
            net_spec((d_in, h1)),                            # w1 (bf16)
            net_spec((1, h1)),                               # b1 (f32)
            net_spec((h1, h2)),                              # w2 (bf16)
            net_spec((1, h2)),                               # b2
            net_spec((h2, h3)),                              # w3 (bf16)
            net_spec((1, h3)),                               # b3
            net_spec((h3, out_dim)),                         # w4 (f32)
            net_spec((1, out_dim)),                          # b4
            shared_spec((1, out_dim)),                       # max_logvar (tiled)
            shared_spec((1, out_dim)),                       # min_logvar (tiled)
        ],
        out_specs=pl.BlockSpec((None, tb, out_dim), lambda n, b: (n, b, 0)),
    )

    weight_bytes = sum(int(w.size) * w.dtype.itemsize for w in (w1, w2, w3, w4))
    bias_bytes = sum(int(b.size) * b.dtype.itemsize for b in (b1, b2, b3, b4))
    cost = pl.CostEstimate(
        flops=2 * num_nets * b_pad * (d_in * h1 + h1 * h2 + h2 * h3 + h3 * out_dim),
        transcendentals=4 * num_nets * b_pad * out_dim,
        bytes_accessed=(weight_bytes + bias_bytes
                        + num_nets * int(x.size) * 4          # x re-fetched per net
                        + num_nets * b_pad * out_dim * 4),
    )

    fused = pl.pallas_call(
        functools.partial(penn_kernel, state_dim=state_dim),
        grid_spec=grid_spec,
        out_shape=jax.ShapeDtypeStruct((num_nets, b_pad, out_dim), jnp.float32),
        compiler_params=pltpu.CompilerParams(
            # nets split across TensorCores (v7x); batch-tile axis sequential per core
            # so each core streams each net's weights exactly once.
            dimension_semantics=("parallel", "arbitrary"),
        ),
        cost_estimate=cost,
    )(x, w1, b1, w2, b2, w3, b3, w4, b4, max_lv_full, min_lv_full)

    fused = fused[:, :batch, :]
    return fused[..., :state_dim], fused[..., state_dim:]


def init_penn_params(key, num_nets, state_dim, action_dim):
    """Deterministic synthetic parameter init at the original (400-wide) sizes,
    stacked over the ensemble axis, f32, mimicking nn.Linear's uniform init scale."""
    d_in = state_dim + action_dim
    sizes = [d_in, HIDDEN1_UNITS, HIDDEN2_UNITS, HIDDEN3_UNITS, 2 * state_dim]
    params = {}
    keys = jax.random.split(key, 8)
    for li, (a, b) in enumerate(zip(sizes[:-1], sizes[1:]), start=1):
        kw, kb = keys[2 * (li - 1)], keys[2 * (li - 1) + 1]
        scale = 1.0 / jnp.sqrt(jnp.float32(a))
        params[f"w{li}"] = jax.random.uniform(
            kw, (num_nets, a, b), jnp.float32, minval=-scale, maxval=scale)
        params[f"b{li}"] = jax.random.uniform(
            kb, (num_nets, 1, b), jnp.float32, minval=-scale, maxval=scale)
    return params


def prepare_params(params):
    """Keep weights HBM-compact (no 400->512 padding).  Layers 1-3 stream as bf16
    (halves the dominant weight HBM traffic); the tiny final layer and all biases
    stay f32 (biases added post-accumulation, layer 4 fully f32)."""
    out = {}
    out["w1"] = params["w1"].astype(jnp.bfloat16)
    out["b1"] = params["b1"].astype(jnp.float32)
    out["w2"] = params["w2"].astype(jnp.bfloat16)
    out["b2"] = params["b2"].astype(jnp.float32)
    out["w3"] = params["w3"].astype(jnp.bfloat16)
    out["b3"] = params["b3"].astype(jnp.float32)
    out["w4"] = params["w4"].astype(jnp.float32)
    out["b4"] = params["b4"].astype(jnp.float32)
    return out


def penn_reference(x, prepared, max_logvar, min_logvar):
    """Pure-JAX reference of the same forward (same bf16 layer-1..3 weights, f32 math)."""
    means, logvars = [], []
    num_nets = prepared["w1"].shape[0]
    s = max_logvar.shape[-1]
    for n in range(num_nets):
        h = x
        for li in range(1, 4):
            w = prepared[f"w{li}"][n].astype(jnp.float32)
            h = jnp.maximum(h @ w + prepared[f"b{li}"][n], 0.0)
        out = h @ prepared["w4"][n] + prepared["b4"][n]
        mean, raw_v = out[:, :s], out[:, s:]
        lv = max_logvar - jax.nn.softplus(max_logvar - raw_v)
        lv = min_logvar + jax.nn.softplus(lv - min_logvar)
        means.append(mean)
        logvars.append(lv)
    return jnp.stack(means), jnp.stack(logvars)


if __name__ == "__main__":
    num_nets = 3
    state_dim = 4
    action_dim = 2
    batch = 8

    key = jax.random.PRNGKey(0)
    k_params, k_x = jax.random.split(key)

    raw_params = init_penn_params(k_params, num_nets, state_dim, action_dim)
    params = prepare_params(raw_params)
    x = jax.random.normal(k_x, (batch, state_dim + action_dim), jnp.float32)

    max_logvar = jnp.full((1, state_dim), -3.0, dtype=jnp.float32)
    min_logvar = jnp.full((1, state_dim), -7.0, dtype=jnp.float32)

    mean, logvar = jax.jit(penn_forward)(x, params, max_logvar, min_logvar)
    jax.block_until_ready((mean, logvar))

    # sanity-check against a plain-JAX reference (loose tol: bf16 activations at the
    # MXU inputs of layers 2-4 vs f32 activations in the reference)
    mean_ref, logvar_ref = penn_reference(x, params, max_logvar, min_logvar)
    assert mean.shape == (num_nets, batch, state_dim)
    assert logvar.shape == (num_nets, batch, state_dim)
    assert jnp.allclose(mean, mean_ref, atol=5e-2, rtol=5e-2)
    assert jnp.allclose(logvar, logvar_ref, atol=5e-2, rtol=5e-2)

    # PENN.forward returns a list of (mean, logvar) per ensemble member:
    outputs = [(mean[i], logvar[i]) for i in range(num_nets)]
    assert len(outputs) == num_nets
    assert outputs[0][0].shape == (batch, state_dim)
    assert outputs[0][1].shape == (batch, state_dim)

    print("KERNEL_OK")
</pallas_src>

<mosaic_0001>
module attributes {stable_mosaic.version = 11 : i64} {
  func.func @penn_kernel(%arg0: i32, %arg1: i32, %arg2: memref<16x6xf32, #tpu.memory_space<vmem>>, %arg3: memref<1x6x400xbf16, #tpu.memory_space<vmem>>, %arg4: memref<1x1x400xf32, #tpu.memory_space<vmem>>, %arg5: memref<1x400x400xbf16, #tpu.memory_space<vmem>>, %arg6: memref<1x1x400xf32, #tpu.memory_space<vmem>>, %arg7: memref<1x400x400xbf16, #tpu.memory_space<vmem>>, %arg8: memref<1x1x400xf32, #tpu.memory_space<vmem>>, %arg9: memref<1x400x8xf32, #tpu.memory_space<vmem>>, %arg10: memref<1x1x8xf32, #tpu.memory_space<vmem>>, %arg11: memref<1x8xf32, #tpu.memory_space<vmem>>, %arg12: memref<1x8xf32, #tpu.memory_space<vmem>>, %arg13: memref<1x16x8xf32, #tpu.memory_space<vmem>>) attributes {dimension_semantics = [#tpu.dimension_semantics<parallel>, #tpu.dimension_semantics<arbitrary>], iteration_bounds = array<i64: 3, 1>, scalar_prefetch = 0 : i64, scratch_operands = 0 : i64, tpu.core_type = #tpu.core_type<tc>, window_params = [{transform_indices = @transform_0, window_bounds = array<i64: 16, 6>}, {transform_indices = @transform_1, window_bounds = array<i64: 1, 6, 400>}, {transform_indices = @transform_2, window_bounds = array<i64: 1, 1, 400>}, {transform_indices = @transform_3, window_bounds = array<i64: 1, 400, 400>}, {transform_indices = @transform_4, window_bounds = array<i64: 1, 1, 400>}, {transform_indices = @transform_5, window_bounds = array<i64: 1, 400, 400>}, {transform_indices = @transform_6, window_bounds = array<i64: 1, 1, 400>}, {transform_indices = @transform_7, window_bounds = array<i64: 1, 400, 8>}, {transform_indices = @transform_8, window_bounds = array<i64: 1, 1, 8>}, {pipeline_mode = #tpu.pipeline_mode<synchronous>, transform_indices = @transform_9, window_bounds = array<i64: 1, 8>}, {pipeline_mode = #tpu.pipeline_mode<synchronous>, transform_indices = @transform_10, window_bounds = array<i64: 1, 8>}, {transform_indices = @transform_11, window_bounds = array<i64: 1, 16, 8>}]} {
    %c0 = arith.constant 0 : index
    %c0_0 = arith.constant 0 : index
    %0 = vector.load %arg2[%c0, %c0_0] : memref<16x6xf32, #tpu.memory_space<vmem>>, vector<16x6xf32>
    %1 = arith.truncf %0 : vector<16x6xf32> to vector<16x6xbf16>
    %c0_1 = arith.constant 0 : index
    %c0_2 = arith.constant 0 : index
    %c0_3 = arith.constant 0 : index
    %2 = vector.load %arg3[%c0_1, %c0_2, %c0_3] : memref<1x6x400xbf16, #tpu.memory_space<vmem>>, vector<1x6x400xbf16>
    %3 = vector.shape_cast %2 : vector<1x6x400xbf16> to vector<6x400xbf16>
    %cst = arith.constant dense<0.000000e+00> : vector<16x400xf32>
    %4 = tpu.matmul %1, %3, %cst {dimension_numbers = #tpu.dot_dimension_numbers<[1], [0], [0], [1], [0, 0, 1, 1], [], []>} : vector<16x6xbf16>, vector<6x400xbf16>, vector<16x400xf32> -> vector<16x400xf32>
    %c0_4 = arith.constant 0 : index
    %c0_5 = arith.constant 0 : index
    %c0_6 = arith.constant 0 : index
    %5 = vector.load %arg4[%c0_4, %c0_5, %c0_6] : memref<1x1x400xf32, #tpu.memory_space<vmem>>, vector<1x1x400xf32>
    %6 = vector.shape_cast %5 : vector<1x1x400xf32> to vector<1x400xf32>
    %7 = vector.broadcast %6 : vector<1x400xf32> to vector<16x400xf32>
    %8 = arith.addf %4, %7 : vector<16x400xf32>
    %cst_7 = arith.constant 0.000000e+00 : f32
    %9 = vector.broadcast %cst_7 : f32 to vector<16x400xf32>
    %10 = arith.maximumf %8, %9 : vector<16x400xf32>
    %11 = arith.truncf %10 : vector<16x400xf32> to vector<16x400xbf16>
    %c0_8 = arith.constant 0 : index
    %c0_9 = arith.constant 0 : index
    %c0_10 = arith.constant 0 : index
    %12 = vector.load %arg5[%c0_8, %c0_9, %c0_10] : memref<1x400x400xbf16, #tpu.memory_space<vmem>>, vector<1x400x400xbf16>
    %13 = vector.shape_cast %12 : vector<1x400x400xbf16> to vector<400x400xbf16>
    %cst_11 = arith.constant dense<0.000000e+00> : vector<16x400xf32>
    %14 = tpu.matmul %11, %13, %cst_11 {dimension_numbers = #tpu.dot_dimension_numbers<[1], [0], [0], [1], [0, 0, 1, 1], [], []>} : vector<16x400xbf16>, vector<400x400xbf16>, vector<16x400xf32> -> vector<16x400xf32>
    %c0_12 = arith.constant 0 : index
    %c0_13 = arith.constant 0 : index
    %c0_14 = arith.constant 0 : index
    %15 = vector.load %arg6[%c0_12, %c0_13, %c0_14] : memref<1x1x400xf32, #tpu.memory_space<vmem>>, vector<1x1x400xf32>
    %16 = vector.shape_cast %15 : vector<1x1x400xf32> to vector<1x400xf32>
    %17 = vector.broadcast %16 : vector<1x400xf32> to vector<16x400xf32>
    %18 = arith.addf %14, %17 : vector<16x400xf32>
    %cst_15 = arith.constant 0.000000e+00 : f32
    %19 = vector.broadcast %cst_15 : f32 to vector<16x400xf32>
    %20 = arith.maximumf %18, %19 : vector<16x400xf32>
    %21 = arith.truncf %20 : vector<16x400xf32> to vector<16x400xbf16>
    %c0_16 = arith.constant 0 : index
    %c0_17 = arith.constant 0 : index
    %c0_18 = arith.constant 0 : index
    %22 = vector.load %arg7[%c0_16, %c0_17, %c0_18] : memref<1x400x400xbf16, #tpu.memory_space<vmem>>, vector<1x400x400xbf16>
    %23 = vector.shape_cast %22 : vector<1x400x400xbf16> to vector<400x400xbf16>
    %cst_19 = arith.constant dense<0.000000e+00> : vector<16x400xf32>
    %24 = tpu.matmul %21, %23, %cst_19 {dimension_numbers = #tpu.dot_dimension_numbers<[1], [0], [0], [1], [0, 0, 1, 1], [], []>} : vector<16x400xbf16>, vector<400x400xbf16>, vector<16x400xf32> -> vector<16x400xf32>
    %c0_20 = arith.constant 0 : index
    %c0_21 = arith.constant 0 : index
    %c0_22 = arith.constant 0 : index
    %25 = vector.load %arg8[%c0_20, %c0_21, %c0_22] : memref<1x1x400xf32, #tpu.memory_space<vmem>>, vector<1x1x400xf32>
    %26 = vector.shape_cast %25 : vector<1x1x400xf32> to vector<1x400xf32>
    %27 = vector.broadcast %26 : vector<1x400xf32> to vector<16x400xf32>
    %28 = arith.addf %24, %27 : vector<16x400xf32>
    %cst_23 = arith.constant 0.000000e+00 : f32
    %29 = vector.broadcast %cst_23 : f32 to vector<16x400xf32>
    %30 = arith.maximumf %28, %29 : vector<16x400xf32>
    %c0_24 = arith.constant 0 : index
    %c0_25 = arith.constant 0 : index
    %c0_26 = arith.constant 0 : index
    %31 = vector.load %arg9[%c0_24, %c0_25, %c0_26] : memref<1x400x8xf32, #tpu.memory_space<vmem>>, vector<1x400x8xf32>
    %32 = vector.shape_cast %31 : vector<1x400x8xf32> to vector<400x8xf32>
    %cst_27 = arith.constant dense<0.000000e+00> : vector<16x8xf32>
    %33 = tpu.matmul %30, %32, %cst_27 {dimension_numbers = #tpu.dot_dimension_numbers<[1], [0], [0], [1], [0, 0, 1, 1], [], []>} : vector<16x400xf32>, vector<400x8xf32>, vector<16x8xf32> -> vector<16x8xf32>
    %c0_28 = arith.constant 0 : index
    %c0_29 = arith.constant 0 : index
    %c0_30 = arith.constant 0 : index
    %34 = vector.load %arg10[%c0_28, %c0_29, %c0_30] : memref<1x1x8xf32, #tpu.memory_space<vmem>>, vector<1x1x8xf32>
    %35 = vector.shape_cast %34 : vector<1x1x8xf32> to vector<1x8xf32>
    %36 = vector.broadcast %35 : vector<1x8xf32> to vector<16x8xf32>
    %37 = arith.addf %33, %36 : vector<16x8xf32>
    %c0_31 = arith.constant 0 : index
    %c0_32 = arith.constant 0 : index
    %38 = vector.load %arg11[%c0_31, %c0_32] : memref<1x8xf32, #tpu.memory_space<vmem>>, vector<1x8xf32>
    %c0_33 = arith.constant 0 : index
    %c0_34 = arith.constant 0 : index
    %39 = vector.load %arg12[%c0_33, %c0_34] : memref<1x8xf32, #tpu.memory_space<vmem>>, vector<1x8xf32>
    %40 = vector.broadcast %38 : vector<1x8xf32> to vector<16x8xf32>
    %41 = arith.subf %40, %37 : vector<16x8xf32>
    %cst_35 = arith.constant 0.000000e+00 : f32
    %42 = vector.broadcast %cst_35 : f32 to vector<16x8xf32>
    %43 = arith.maximumf %41, %42 : vector<16x8xf32>
    %44 = math.absf %41 : vector<16x8xf32>
    %cst_36 = arith.constant 0.000000e+00 : f32
    %45 = vector.broadcast %cst_36 : f32 to vector<16x8xf32>
    %46 = arith.subf %45, %44 : vector<16x8xf32>
    %47 = math.exp %46 : vector<16x8xf32>
    %48 = math.log1p %47 : vector<16x8xf32>
    %49 = arith.addf %43, %48 : vector<16x8xf32>
    %50 = vector.broadcast %38 : vector<1x8xf32> to vector<16x8xf32>
    %51 = arith.subf %50, %49 : vector<16x8xf32>
    %52 = vector.broadcast %39 : vector<1x8xf32> to vector<16x8xf32>
    %53 = arith.subf %51, %52 : vector<16x8xf32>
    %cst_37 = arith.constant 0.000000e+00 : f32
    %54 = vector.broadcast %cst_37 : f32 to vector<16x8xf32>
    %55 = arith.maximumf %53, %54 : vector<16x8xf32>
    %56 = math.absf %53 : vector<16x8xf32>
    %cst_38 = arith.constant 0.000000e+00 : f32
    %57 = vector.broadcast %cst_38 : f32 to vector<16x8xf32>
    %58 = arith.subf %57, %56 : vector<16x8xf32>
    %59 = math.exp %58 : vector<16x8xf32>
    %60 = math.log1p %59 : vector<16x8xf32>
    %61 = arith.addf %55, %60 : vector<16x8xf32>
    %62 = vector.broadcast %39 : vector<1x8xf32> to vector<16x8xf32>
    %63 = arith.addf %62, %61 : vector<16x8xf32>
    %64 = tpu.iota {dimensions = array<i32: 1>} : vector<16x8xi32>
    %c4_i32 = arith.constant 4 : i32
    %65 = vector.broadcast %c4_i32 : i32 to vector<16x8xi32>
    %66 = arith.cmpi slt, %64, %65 : vector<16x8xi32>
    %67 = arith.select %66, %37, %63 : vector<16x8xi1>, vector<16x8xf32>
    %c0_39 = arith.constant 0 : index
    %c0_40 = arith.constant 0 : index
    %c0_41 = arith.constant 0 : index
    %68 = vector.load %arg13[%c0_39, %c0_40, %c0_41] : memref<1x16x8xf32, #tpu.memory_space<vmem>>, vector<1x16x8xf32>
    %69 = vector.shape_cast %68 : vector<1x16x8xf32> to vector<16x8xf32>
    %70 = vector.shape_cast %67 : vector<16x8xf32> to vector<1x16x8xf32>
    tpu.vector_store %arg13[%c0_39, %c0_40, %c0_41], %70 {strides = array<i32>} : memref<1x16x8xf32, #tpu.memory_space<vmem>>, vector<1x16x8xf32>,
    return
  }
  func.func @transform_0(%arg0: i32, %arg1: i32) -> (i32, i32) {
    %c0_i32 = arith.constant 0 : i32
    %c0_i32_0 = arith.constant 0 : i32
    return %arg1, %c0_i32 : i32, i32
  }
  func.func @transform_1(%arg0: i32, %arg1: i32) -> (i32, i32, i32) {
    %c0_i32 = arith.constant 0 : i32
    %c0_i32_0 = arith.constant 0 : i32
    %c0_i32_1 = arith.constant 0 : i32
    return %arg0, %c0_i32, %c0_i32_0 : i32, i32, i32
  }
  func.func @transform_2(%arg0: i32, %arg1: i32) -> (i32, i32, i32) {
    %c0_i32 = arith.constant 0 : i32
    %c0_i32_0 = arith.constant 0 : i32
    %c0_i32_1 = arith.constant 0 : i32
    return %arg0, %c0_i32, %c0_i32_0 : i32, i32, i32
  }
  func.func @transform_3(%arg0: i32, %arg1: i32) -> (i32, i32, i32) {
    %c0_i32 = arith.constant 0 : i32
    %c0_i32_0 = arith.constant 0 : i32
    %c0_i32_1 = arith.constant 0 : i32
    return %arg0, %c0_i32, %c0_i32_0 : i32, i32, i32
  }
  func.func @transform_4(%arg0: i32, %arg1: i32) -> (i32, i32, i32) {
    %c0_i32 = arith.constant 0 : i32
    %c0_i32_0 = arith.constant 0 : i32
    %c0_i32_1 = arith.constant 0 : i32
    return %arg0, %c0_i32, %c0_i32_0 : i32, i32, i32
  }
  func.func @transform_5(%arg0: i32, %arg1: i32) -> (i32, i32, i32) {
    %c0_i32 = arith.constant 0 : i32
    %c0_i32_0 = arith.constant 0 : i32
    %c0_i32_1 = arith.constant 0 : i32
    return %arg0, %c0_i32, %c0_i32_0 : i32, i32, i32
  }
  func.func @transform_6(%arg0: i32, %arg1: i32) -> (i32, i32, i32) {
    %c0_i32 = arith.constant 0 : i32
    %c0_i32_0 = arith.constant 0 : i32
    %c0_i32_1 = arith.constant 0 : i32
    return %arg0, %c0_i32, %c0_i32_0 : i32, i32, i32
  }
  func.func @transform_7(%arg0: i32, %arg1: i32) -> (i32, i32, i32) {
    %c0_i32 = arith.constant 0 : i32
    %c0_i32_0 = arith.constant 0 : i32
    %c0_i32_1 = arith.constant 0 : i32
    return %arg0, %c0_i32, %c0_i32_0 : i32, i32, i32
  }
  func.func @transform_8(%arg0: i32, %arg1: i32) -> (i32, i32, i32) {
    %c0_i32 = arith.constant 0 : i32
    %c0_i32_0 = arith.constant 0 : i32
    %c0_i32_1 = arith.constant 0 : i32
    return %arg0, %c0_i32, %c0_i32_0 : i32, i32, i32
  }
  func.func @transform_9(%arg0: i32, %arg1: i32) -> (i32, i32) {
    %c0_i32 = arith.constant 0 : i32
    %c0_i32_0 = arith.constant 0 : i32
    %c0_i32_1 = arith.constant 0 : i32
    return %c0_i32, %c0_i32_0 : i32, i32
  }
  func.func @transform_10(%arg0: i32, %arg1: i32) -> (i32, i32) {
    %c0_i32 = arith.constant 0 : i32
    %c0_i32_0 = arith.constant 0 : i32
    %c0_i32_1 = arith.constant 0 : i32
    return %c0_i32, %c0_i32_0 : i32, i32
  }
  func.func @transform_11(%arg0: i32, %arg1: i32) -> (i32, i32, i32) {
    %c0_i32 = arith.constant 0 : i32
    %c0_i32_0 = arith.constant 0 : i32
    return %arg0, %arg1, %c0_i32 : i32, i32, i32
  }
}

</mosaic_0001>

<bundles_post_ra>
// kernel: penn_forward.1
= control target key start
LH: loop header
LB: loop body
LE: loop exit
PB: predicated region body
PF: predicated region fallthrough
CT: control target
= control target key end

     0   :  { %s4832_s0 = inlined_call_operand.vmem [shape: f32[16,6], index: 0, kind: input, shape index: {}]   ;;  %s4833_s1 = inlined_call_operand.hbm [shape: bf16[3,6,400], index: 1, kind: input, shape index: {}]   ;;  %s4834_s2 = inlined_call_operand.hbm [shape: f32[3,1,400], index: 2, kind: input, shape index: {}]   ;;  %s4835_s3 = inlined_call_operand.hbm [shape: bf16[3,400,400], index: 3, kind: input, shape index: {}]   ;;  %s4836_s4 = inlined_call_operand.hbm [shape: f32[3,1,400], index: 4, kind: input, shape index: {}]   ;;  %s4837_s5 = inlined_call_operand.hbm [shape: bf16[3,400,400], index: 5, kind: input, shape index: {}]   ;;  %s4838_s6 = inlined_call_operand.hbm [shape: f32[3,1,400], index: 6, kind: input, shape index: {}]   ;;  %s4839_s7 = inlined_call_operand.vmem [shape: f32[3,400,8], index: 7, kind: input, shape index: {}]   ;;  %s4840_s8 = inlined_call_operand.hbm [shape: f32[3,1,8], index: 8, kind: input, shape index: {}]   ;;  %s4841_s9 = inlined_call_operand.vmem [shape: f32[1,8], index: 9, kind: input, shape index: {}]   ;;  %s4842_s10 = inlined_call_operand.vmem [shape: f32[1,8], index: 10, kind: input, shape index: {}]   ;;  %s4843_s11 = inlined_call_operand.vmem [shape: f32[3,16,8], index: 11, kind: output, shape index: {}]  }
   0x1   :  { %4852 = sst [smem:[#allocation20_spill]] %s4833_s1 }
   0x2   :  { %4853 = sst [smem:[#allocation21_spill]] %s4834_s2 }
   0x3   :  { %4854 = sst [smem:[#allocation22_spill]] %s4835_s3 }
   0x4   :  { %4855 = sst [smem:[#allocation23_spill]] %s4836_s4 }
   0x5   :  { %4856 = sst [smem:[#allocation24_spill]] %s4837_s5 }
   0x6   :  { %4857 = sst [smem:[#allocation25_spill]] %s4841_s9 }
   0x7   :  { %4858 = sst [smem:[#allocation26_spill]] %s4842_s10 }
   0x8   :  { %4859 = sst [smem:[#allocation27_spill]] %s4843_s11 }
   0x9   :  { %16 = vsyncpa [#allocation3], 0 }
   0xa   :  { %18 = vsyncpa [#allocation3 + $0x1], 0 }
   0xb   :  { %19 = vsyncpa [#allocation5], 0 }
   0xc   :  { %21 = vsyncpa [#allocation5 + $0x1], 0 }
   0xd   :  { %22 = vsyncpa [#allocation8], 0 }
   0xe   :  { %24 = vsyncpa [#allocation8 + $0x1], 0 }
   0xf   :  { %25 = vsyncpa [#allocation11], 0 }
  0x10   :  { %27 = vsyncpa [#allocation11 + $0x1], 0  ;;  %s4146_s17 = smov 0   ;;  %s4148_s18 = smov 0  }
  0x11   :  { %s4150_s19 = smov 0   ;;  %s4152_s20 = smov 0  }
  0x12   :  { %s4154_s21 = smov 0   ;;  %s4156_s22 = smov 0  }
  0x13 LB: > { %4860 = sst [smem:[#allocation17_spill]] %s4061_s19  ;;  %s4844_s23 = sadd.s32 4294967295, %s4073_s22   ;;  %s4073_s22 = sphi %s4156_s22, %s33_s22   ;;  %s4069_s21 = sphi %s4154_s21, %s4893_s21   ;;  %s4065_s20 = sphi %s4152_s20, %s4892_s20   ;;  %s4061_s19 = sphi %s4150_s19, %s4888_s19   ;;  %s4057_s18 = sphi %s4148_s18, %s4891_s18   ;;  %s4053_s17 = sphi %s4146_s17, %s4890_s17  }
  0x14   : > { %s45_s24 = sadd.s32 1, %s4069_s21  ;;  %s78_s25 = sadd.s32 1, %s4061_s19 }
  0x15   : > { %p47_p0 = scmp.ge.s32.totalorder %s45_s24, 3  ;;  %p85_p1 = scmp.ne.s32.totalorder %s4061_s19, %s4057_s18 }
  0x16   : > { %p86_p2 = scmp.eq.s32.totalorder %s4073_s22, 0  ;;  %p91_p4 = scmp.ne.s32.totalorder %s4057_s18, %s4053_s17 }
  0x17   : > { %s4895_s24 = smov (%p47_p0, %s45_s24), 0  ;;  %p92_p5 = scmp.eq.s32.totalorder %s4844_s23, 0 }
  0x18   : > { %4861 = sst [smem:[#allocation18_spill]] %s4895_s24  ;;  %p87_p3 = por %p86_p2, %p85_p1 }
  0x19   : > { %s75_s26 = ssub.s32 %s4069_s21, %s4895_s24  ;;  %p4187_p7 = por %p92_p5, %p91_p4 }
  0x1a   : > { %p76_p6 = scmp.eq.s32.totalorder %s75_s26, 0  ;;  %p3428_p8 = scmp.lt.s32.totalorder %s4073_s22, 3 }
  0x1b   : > { %s4862_s27 = scalar_select %p4187_p7, 1, 0 }
  0x1c   : > { %s4193_s28 = scalar_select %p76_p6, %s4061_s19, %s78_s25  }
  0x1d   : > { %s4196_s29 = sand.u32 1, %s4061_s19   ;;  %p4198_p9 = pnand %p3428_p8, %p87_p3 }
  0x1e   : > { %4863 = sst [smem:[#allocation19_spill]] %s4193_s28  ;;  %s4203_s12 = sand.u32 1, %s4073_s22  }
  0x1f   : > { %s4864_s30 = scalar_select %p4198_p9, 1, 0 }
  0x20   : > { %s4206_s13 = sshll.u32 %s4196_s29, 2  ;;  %s4209_s14 = sshll.u32 %s4069_s21, 6 }
  0x21   : > { %s4865_s2 = sld [smem:[#allocation21_spill]]  ;;  %s405_s25 = scalar_lea.vmem [#allocation4], %s4206_s13 }
  0x22   : > { %s413_s26 = sshll.u32 %s405_s25, 4  ;;  %p4226_p12 = pneg %p4198_p9  ;;  %s4218_s26 = int_to_ptr.vmem [resolvable:$true] %s413_s26 }
  0x27   : > { %s4215_s17 = scalar_lea.hbm %s4865_s2, %s4209_s14  ;;  %s3806_s19 = scalar_lea.hbm %s4865_s2, 192 }
  0x28   : > { %s3801_s24 = scalar_lea.hbm %s4215_s17, 64  ;;  %p3807_p1 = scmp.lt.u32.totalorder %s4215_s17, %s4865_s2 }
  0x29   : > { %p3802_p11 = scmp.ne.s32.totalorder %s4215_s17, %s3801_s24  ;;  %p3808_p2 = scmp.lt.u32.totalorder %s3806_s19, %s3801_s24 }
  0x2a   : > { %p3810_p4 = scmp.lt.u32.totalorder %s3801_s24, %s4215_s17 }
  0x2b   : > { %p3804_p13 = pnand %p4226_p12, %p3802_p11  ;;  %p3809_p3 = por %p3808_p2, %p3807_p1 }
  0x2d   : > { %p3805_p0 = pneg %p3804_p13  ;;  %p3811_p5 = por %p3810_p4, %p3809_p3 }
  0x2f   : > { %p3812_p6 = pnand %p3811_p5, %p3805_p0 }
  0x31   : > { %3815 = shalt.err (!%p3812_p6)
}
  0x32   : > { %s3816_s23 = scalar_lea.vmem %s4218_s26, 64  ;;  %s4075_s15 = smov [#allocation4]  }
  0x33   : > { %p3817_p8 = scmp.ne.s32.totalorder %s4218_s26, %s3816_s23  ;;  %s3821_s16 = sshll.u32 %s4075_s15, 4  ;;  %s3822_s16 = int_to_ptr.vmem [resolvable:$false] %s3821_s16 }
  0x34   : > { %s3823_s11 = scalar_lea.vmem %s3822_s16, 128  ;;  %p3824_p10 = scmp.lt.s32.totalorder %s4218_s26, %s3822_s16 }
  0x35   : > { %p3819_p11 = pnand %p3817_p8, %p4226_p12  ;;  %p3825_p7 = scmp.lt.s32.totalorder %s3823_s11, %s3816_s23 }
  0x37   : > { %p3820_p13 = pneg %p3819_p11  ;;  %p3826_p1 = por %p3825_p7, %p3824_p10 }
  0x39   : > { %p3827_p2 = pnand %p3826_p1, %p3820_p13 }
  0x3b   : > { %3830 = shalt.err (!%p3827_p2)
}
  0x3c   : > { %s4867_s19 = scalar_lea.sflag [#allocation5], %s4203_s12  ;;  %p523_p0 = scmp.lt.s32.totalorder %s4073_s22, 4 }
  0x3d   : > { %3412 = dma.hbm_to_vmem [thread:$0]  (!%p4198_p9), %s4215_s17, 64, %s4218_s26, %s4867_s19  }
  0x3e   : > { %s4868_s4 = sld [smem:[#allocation23_spill]]  ;;  %p4869_p7 = scmp.ge.s32.totalorder %s4073_s22, 1 }
  0x3f   : > { %s445_s16 = scalar_lea.vmem [#allocation7], %s4206_s13 }
  0x40   : > { %p4260_p10 = pnand %p4869_p7, %p523_p0  ;;  %s453_s11 = sshll.u32 %s445_s16, 4  ;;  %s454_s11 = int_to_ptr.vmem [resolvable:$true] %s453_s11 }
  0x42   : > { %s4870_s15 = scalar_select %p4260_p10, 1, 0 }
  0x44   : > { %s4256_s23 = scalar_lea.hbm %s4868_s4, %s4209_s14  ;;  %s3836_s24 = scalar_lea.hbm %s4868_s4, 192 }
  0x45   : > { %s3831_s17 = scalar_lea.hbm %s4256_s23, 64  ;;  %p3837_p6 = scmp.lt.u32.totalorder %s4256_s23, %s4868_s4 }
  0x46   : > { %p3832_p3 = scmp.ne.s32.totalorder %s4256_s23, %s3831_s17  ;;  %p3838_p8 = scmp.lt.u32.totalorder %s3836_s24, %s3831_s17 }
  0x47   : > { %p3840_p13 = scmp.lt.u32.totalorder %s3831_s17, %s4256_s23 }
  0x48   : > { %p3834_p4 = pnand %p3832_p3, %p4226_p12  ;;  %p3839_p11 = por %p3838_p8, %p3837_p6 }
  0x4a   : > { %p3835_p5 = pneg %p3834_p4  ;;  %p3841_p1 = por %p3840_p13, %p3839_p11 }
  0x4c   : > { %p3842_p2 = pnand %p3841_p1, %p3835_p5 }
  0x4e   : > { %3845 = shalt.err (!%p3842_p2)
}
  0x4f   : > { %s3846_s16 = scalar_lea.vmem %s454_s11, 64  ;;  %s4076_s2 = smov [#allocation7]  }
  0x50   : > { %p3847_p0 = scmp.ne.s32.totalorder %s454_s11, %s3846_s16  ;;  %s3851_s9 = sshll.u32 %s4076_s2, 4  ;;  %s3852_s9 = int_to_ptr.vmem [resolvable:$false] %s3851_s9 }
  0x51   : > { %s3853_s26 = scalar_lea.vmem %s3852_s9, 128  ;;  %p3854_p4 = scmp.lt.s32.totalorder %s454_s11, %s3852_s9 }
  0x52   : > { %p3849_p7 = pnand %p3847_p0, %p4226_p12  ;;  %p3855_p10 = scmp.lt.s32.totalorder %s3853_s26, %s3846_s16 }
  0x54   : > { %p3850_p3 = pneg %p3849_p7  ;;  %p3856_p9 = por %p3855_p10, %p3854_p4 }
  0x56   : > { %p3857_p6 = pnand %p3856_p9, %p3850_p3 }
  0x58   : > { %3860 = shalt.err (!%p3857_p6)
}
  0x59   : > { %p4871_p8 = scmp.ne.s32.totalorder %s4864_s30, 0  ;;  %s4872_s10 = scalar_lea.sflag [#allocation8], %s4203_s12 }
  0x5a   : > { %s4289_s2 = scalar_lea.hbm %s4838_s6, %s4209_s14  ;;  %s485_s9 = scalar_lea.vmem [#allocation10], %s4206_s13 }
  0x5b   : > { %3418 = dma.hbm_to_vmem [thread:$0]  (!%p4871_p8), %s4256_s23, 64, %s454_s11, %s4872_s10  }
  0x5c   : > { %s493_s24 = sshll.u32 %s485_s9, 4  ;;  %s4850_s25 = scalar_lea.sflag [#allocation11], %s4203_s12  ;;  %s494_s24 = int_to_ptr.vmem [resolvable:$true] %s493_s24 }
  0x5d   : > { %s3861_s16 = scalar_lea.hbm %s4289_s2, 64  ;;  %s3866_s11 = scalar_lea.hbm %s4838_s6, 192 }
  0x5e   : > { %p3862_p9 = scmp.ne.s32.totalorder %s4289_s2, %s3861_s16  ;;  %p3867_p11 = scmp.lt.u32.totalorder %s4289_s2, %s4838_s6 }
  0x5f   : > { %p3868_p13 = scmp.lt.u32.totalorder %s3866_s11, %s3861_s16  ;;  %p3870_p2 = scmp.lt.u32.totalorder %s3861_s16, %s4289_s2 }
  0x60   : > { %p3864_p10 = pnand %p3862_p9, %p4226_p12 }
  0x61   : > { %p3869_p1 = por %p3868_p13, %p3867_p11 }
  0x62   : > { %p3865_p5 = pneg %p3864_p10 }
  0x63   : > { %p3871_p0 = por %p3870_p2, %p3869_p1 }
  0x65   : > { %p3872_p7 = pnand %p3871_p0, %p3865_p5 }
  0x67   : > { %3875 = shalt.err (!%p3872_p7)
}
  0x68   : > { %s3876_s13 = scalar_lea.vmem %s494_s24, 64  ;;  %s4077_s17 = smov [#allocation10]  }
  0x69   : > { %p3877_p3 = scmp.ne.s32.totalorder %s494_s24, %s3876_s13  ;;  %s3881_s19 = sshll.u32 %s4077_s17, 4  ;;  %s3882_s19 = int_to_ptr.vmem [resolvable:$false] %s3881_s19 }
  0x6a   : > { %s3883_s9 = scalar_lea.vmem %s3882_s19, 128  ;;  %p3884_p9 = scmp.lt.s32.totalorder %s494_s24, %s3882_s19 }
  0x6b   : > { %p3879_p4 = pnand %p3877_p3, %p4226_p12  ;;  %p3885_p10 = scmp.lt.s32.totalorder %s3883_s9, %s3876_s13 }
  0x6d   : > { %p3880_p6 = pneg %p3879_p4  ;;  %p3886_p8 = por %p3885_p10, %p3884_p9 }
  0x6f   : > { %p3887_p11 = pnand %p3886_p8, %p3880_p6 }
  0x71   : > { %3890 = shalt.err (!%p3887_p11)
}
  0x72   : > { %p4873_p13 = scmp.ne.s32.totalorder %s4864_s30, 0  ;;  %s3010_s16 = sshll.u32 %s4196_s29, 4 }
  0x73   : > { %s3252_s26 = sshll.u32 %s4069_s21, 8  ;;  %s4874_s1 = sld [smem:[#allocation20_spill]] }
  0x74   : > { %3424 = dma.hbm_to_vmem [thread:$0]  (!%p4873_p13), %s4289_s2, 64, %s494_s24, %s4850_s25  }
  0x75   : > { %s386_s14 = scalar_lea.vmem [#allocation2], %s3010_s16  ;;  %s3386_s17 = smul.u32 800, %s4196_s29 }
  0x76   : > { %s394_s13 = sshll.u32 %s386_s14, 4  ;;  %s383_s19 = scalar_lea.sflag [#allocation3], %s4196_s29  ;;  %s4319_s13 = int_to_ptr.vmem [resolvable:$true] %s394_s13 }
  0x79   : > { %s4317_s10 = scalar_lea.hbm %s4874_s1, %s3252_s26  ;;  %s3896_s26 = scalar_lea.hbm %s4874_s1, 768 }
  0x7a   : > { %s3891_s9 = scalar_lea.hbm %s4317_s10, 256  ;;  %p3897_p2 = scmp.lt.u32.totalorder %s4317_s10, %s4874_s1 }
  0x7b   : > { %p3892_p8 = scmp.ne.s32.totalorder %s4317_s10, %s3891_s9  ;;  %p3898_p0 = scmp.lt.u32.totalorder %s3896_s26, %s3891_s9 }
  0x7c   : > { %p3900_p3 = scmp.lt.u32.totalorder %s3891_s9, %s4317_s10 }
  0x7d   : > { %p3894_p5 = pnand %p3892_p8, %p4226_p12  ;;  %p3899_p7 = por %p3898_p0, %p3897_p2 }
  0x7f   : > { %p3895_p1 = pneg %p3894_p5  ;;  %p3901_p4 = por %p3900_p3, %p3899_p7 }
  0x81   : > { %p3902_p6 = pnand %p3901_p4, %p3895_p1 }
  0x83   : > { %3905 = shalt.err (!%p3902_p6)
}
  0x84   : > { %s3906_s16 = scalar_lea.vmem %s4319_s13, 256  ;;  %s4078_s14 = smov [#allocation2]  }
  0x85   : > { %p3907_p9 = scmp.ne.s32.totalorder %s4319_s13, %s3906_s16  ;;  %s3911_s2 = sshll.u32 %s4078_s14, 4  ;;  %s3912_s2 = int_to_ptr.vmem [resolvable:$false] %s3911_s2 }
  0x86   : > { %s3913_s24 = scalar_lea.vmem %s3912_s2, 512  ;;  %p3914_p8 = scmp.lt.s32.totalorder %s4319_s13, %s3912_s2 }
  0x87   : > { %p3909_p10 = pnand %p3907_p9, %p4226_p12  ;;  %p3915_p5 = scmp.lt.s32.totalorder %s3913_s24, %s3906_s16 }
  0x89   : > { %p3910_p11 = pneg %p3909_p10  ;;  %p3916_p2 = por %p3915_p5, %p3914_p8 }
  0x8b   : > { %p3917_p0 = pnand %p3916_p2, %p3910_p11 }
  0x8d   : > { %3920 = shalt.err (!%p3917_p0)
}
  0x8e   : > { %3409 = dma.hbm_to_vmem [thread:$0]  (!%p4873_p13), %s4317_s10, 256, %s4319_s13, %s383_s19  }
  0x8f   : > { %s3387_s9 = smul.u32 12800, %s4069_s21  ;;  %s424_s26 = scalar_lea.vmem [#allocation6], %s3386_s17 }
  0x90   : > { %s431_s23 = sshll.u32 %s424_s26, 4  ;;  %s4875_s3 = sld [smem:[#allocation22_spill]]  ;;  %s4354_s23 = int_to_ptr.vmem [resolvable:$true] %s431_s23 }
  0x96   : > { %s4352_s16 = scalar_lea.hbm %s4875_s3, %s3387_s9  ;;  %s3926_s19 = scalar_lea.hbm %s4875_s3, 38400 }
  0x97   : > { %s3921_s2 = scalar_lea.hbm %s4352_s16, 12800  ;;  %p3927_p4 = scmp.lt.u32.totalorder %s4352_s16, %s4875_s3 }
  0x98   : > { %p3922_p1 = scmp.ne.s32.totalorder %s4352_s16, %s3921_s2  ;;  %p3928_p6 = scmp.lt.u32.totalorder %s3926_s19, %s3921_s2 }
  0x99   : > { %p3930_p10 = scmp.lt.u32.totalorder %s3921_s2, %s4352_s16 }
  0x9a   : > { %p3924_p7 = pnand %p3922_p1, %p4226_p12  ;;  %p3929_p9 = por %p3928_p6, %p3927_p4 }
  0x9c   : > { %p3925_p3 = pneg %p3924_p7  ;;  %p3931_p11 = por %p3930_p10, %p3929_p9 }
  0x9e   : > { %p3932_p8 = pnand %p3931_p11, %p3925_p3 }
  0xa0   : > { %3935 = shalt.err (!%p3932_p8)
}
  0xa1   : > { %s3936_s11 = scalar_lea.vmem %s4354_s23, 12800  ;;  %s4079_s14 = smov [#allocation6]  }
  0xa2   : > { %p3937_p5 = scmp.ne.s32.totalorder %s4354_s23, %s3936_s11  ;;  %s3941_s10 = sshll.u32 %s4079_s14, 4  ;;  %s3942_s10 = int_to_ptr.vmem [resolvable:$false] %s3941_s10 }
  0xa3   : > { %s3943_s13 = scalar_lea.vmem %s3942_s10, 25600  ;;  %p3944_p1 = scmp.lt.s32.totalorder %s4354_s23, %s3942_s10 }
  0xa4   : > { %p3939_p2 = pnand %p3937_p5, %p4226_p12  ;;  %p3945_p7 = scmp.lt.s32.totalorder %s3943_s13, %s3936_s11 }
  0xa6   : > { %p3940_p0 = pneg %p3939_p2  ;;  %p3946_p4 = por %p3945_p7, %p3944_p1 }
  0xa8   : > { %p3947_p6 = pnand %p3946_p4, %p3940_p0 }
  0xaa   : > { %3950 = shalt.err (!%p3947_p6)
}
  0xab   : > { %s4080_s2 = smov 256   ;;  %s4081_s19 = smov 16  }
  0xac   : > { %s4876_s24 = scalar_lea.sflag [#allocation5], %s4203_s12  ;;  %s4877_s5 = sld [smem:[#allocation24_spill]] }
  0xad   : > { %3415 = dma.hbm_to_vmem [thread:$0]  (!%p4873_p13), %s4352_s16, 12800, %s4354_s23, %s4876_s24, %s4080_s2, %s4080_s2, %s4081_s19  }
  0xae   : > { %s464_s10 = scalar_lea.vmem [#allocation9], %s3386_s17 }
  0xaf   : > { %s471_s13 = sshll.u32 %s464_s10, 4  ;;  %s4391_s13 = int_to_ptr.vmem [resolvable:$true] %s471_s13 }
  0xb2   : > { %s4387_s14 = scalar_lea.hbm %s4877_s5, %s3387_s9  ;;  %s3956_s24 = scalar_lea.hbm %s4877_s5, 38400 }
  0xb3   : > { %s3951_s25 = scalar_lea.hbm %s4387_s14, 12800  ;;  %p3957_p11 = scmp.lt.u32.totalorder %s4387_s14, %s4877_s5 }
  0xb4   : > { %p3952_p3 = scmp.ne.s32.totalorder %s4387_s14, %s3951_s25  ;;  %p3958_p8 = scmp.lt.u32.totalorder %s3956_s24, %s3951_s25 }
  0xb5   : > { %p3960_p2 = scmp.lt.u32.totalorder %s3951_s25, %s4387_s14 }
  0xb6   : > { %p3954_p9 = pnand %p3952_p3, %p4226_p12  ;;  %p3959_p5 = por %p3958_p8, %p3957_p11 }
  0xb8   : > { %p3955_p10 = pneg %p3954_p9  ;;  %p3961_p0 = por %p3960_p2, %p3959_p5 }
  0xba   : > { %p3962_p1 = pnand %p3961_p0, %p3955_p10 }
  0xbc   : > { %3965 = shalt.err (!%p3962_p1)
}
  0xbd   : > { %s3966_s17 = scalar_lea.vmem %s4391_s13, 12800  ;;  %s4082_s11 = smov [#allocation9]  }
  0xbe   : > { %p3967_p7 = scmp.ne.s32.totalorder %s4391_s13, %s3966_s17  ;;  %s3971_s10 = sshll.u32 %s4082_s11, 4  ;;  %s3972_s10 = int_to_ptr.vmem [resolvable:$false] %s3971_s10 }
  0xbf   : > { %s3973_s23 = scalar_lea.vmem %s3972_s10, 25600  ;;  %p3974_p3 = scmp.lt.s32.totalorder %s4391_s13, %s3972_s10 }
  0xc0   : > { %p3969_p4 = pnand %p3967_p7, %p4226_p12  ;;  %p3975_p9 = scmp.lt.s32.totalorder %s3973_s23, %s3966_s17 }
  0xc2   : > { %p3970_p6 = pneg %p3969_p4  ;;  %p3976_p11 = por %p3975_p9, %p3974_p3 }
  0xc4   : > { %p3977_p8 = pnand %p3976_p11, %p3970_p6 }
  0xc6   : > { %3980 = shalt.err (!%p3977_p8)
}
  0xc7   : > { %s4878_s25 = scalar_lea.sflag [#allocation8], %s4203_s12  ;;  %s3024_s16 = sshll.u32 %s4069_s21, 4 }
  0xc8   : > { %3421 = dma.hbm_to_vmem [thread:$0]  (!%p4873_p13), %s4387_s14, 12800, %s4391_s13, %s4878_s25, %s4080_s2, %s4080_s2, %s4081_s19  }
  0xc9   : > { %s511_s24 = scalar_lea.vmem [#allocation12], %s4196_s29  ;;  %s516_s11 = scalar_lea.hbm %s4840_s8, %s3024_s16 }
  0xca   : > { %s518_s9 = sshll.u32 %s511_s24, 4  ;;  %s3981_s10 = scalar_lea.hbm %s516_s11, 16  ;;  %s519_s9 = int_to_ptr.vmem [resolvable:$true] %s518_s9 }
  0xcb   : > { %p3982_p10 = scmp.ne.s32.totalorder %s516_s11, %s3981_s10  ;;  %s3986_s3 = scalar_lea.hbm %s4840_s8, 48 }
  0xcc   : > { %p3987_p0 = scmp.lt.u32.totalorder %s516_s11, %s4840_s8  ;;  %p3988_p1 = scmp.lt.u32.totalorder %s3986_s3, %s3981_s10 }
  0xcd   : > { %p3984_p5 = pnand %p3982_p10, %p4226_p12  ;;  %p3990_p4 = scmp.lt.u32.totalorder %s3981_s10, %s516_s11 }
  0xce   : > { %p3989_p7 = por %p3988_p1, %p3987_p0 }
  0xcf   : > { %p3985_p2 = pneg %p3984_p5 }
  0xd0   : > { %p3991_p6 = por %p3990_p4, %p3989_p7 }
  0xd2   : > { %p3992_p3 = pnand %p3991_p6, %p3985_p2 }
  0xd4   : > { %3995 = shalt.err (!%p3992_p3)
}
  0xd5   : > { %s3996_s29 = scalar_lea.vmem %s519_s9, 16  ;;  %s4083_s2 = smov [#allocation12]  }
  0xd6   : > { %p3997_p9 = scmp.ne.s32.totalorder %s519_s9, %s3996_s29  ;;  %s4001_s19 = sshll.u32 %s4083_s2, 4  ;;  %s4002_s19 = int_to_ptr.vmem [resolvable:$false] %s4001_s19 }
  0xd7   : > { %s4003_s1 = scalar_lea.vmem %s4002_s19, 32  ;;  %p4004_p10 = scmp.lt.s32.totalorder %s519_s9, %s4002_s19 }
  0xd8   : > { %p3999_p11 = pnand %p3997_p9, %p4226_p12  ;;  %p4005_p5 = scmp.lt.s32.totalorder %s4003_s1, %s3996_s29 }
  0xda   : > { %p4000_p8 = pneg %p3999_p11  ;;  %p4006_p13 = por %p4005_p5, %p4004_p10 }
  0xdc   : > { %p4007_p0 = pnand %p4006_p13, %p4000_p8 }
  0xde   : > { %4010 = shalt.err (!%p4007_p0)
}
  0xdf   : > { %p4879_p1 = scmp.ne.s32.totalorder %s4864_s30, 0  ;;  %s4880_s3 = scalar_lea.sflag [#allocation11], %s4203_s12 }
  0xe0   : > { %p4881_p2 = scmp.ne.s32.totalorder %s4870_s15, 0 }
  0xe1   : > { %3427 = dma.hbm_to_vmem [thread:$0]  (!%p4879_p1), %s516_s11, 16, %s519_s9, %s4880_s3  }
  0xe2   : > { %527 = sbr.rel (%p4881_p2) target bundleno = 1289 (0x509), region = 64  ;;  %s4441_s4 = sand.u32 (!%p4881_p2), 1, %s4057_s18  }
  0xe3   : > { %s3026_s5 = sshll.u32 (!%p4881_p2), %s4441_s4, 4  ;;  %s530_s28 = scalar_lea.sflag (!%p4881_p2), [#allocation3], %s4441_s4 }
  0xe4   : > { %s533_s14 = scalar_lea.vmem (!%p4881_p2), [#allocation2], %s3026_s5  ;;  %p4882_p12 = scmp.ne.s32.totalorder (!%p4881_p2), %s4862_s27, 0 }
  0xe9   : > { %4036 = dma.done.wait (%p4882_p12), %s530_s28, 256  }
  0xea   : > { %4038 = vsyncadd (%p4882_p12), %s530_s28, 4294967040  ;;  %s4883_s30 = sadd.s32 4294967295, %s4073_s22   ;;  %s4452_s15 = sshll.u32 %s4441_s4, 2 }
  0xeb   : > { %s538_s12 = sand.u32 1, %s4883_s30   ;;  %s542_s25 = scalar_lea.vmem [#allocation4], %s4452_s15 }
  0xec   : > { %s539_s13 = scalar_lea.sflag [#allocation5], %s538_s12 }
  0xed   : > { %4040 = dma.done.wait (%p4882_p12), %s539_s13, 12864  }
  0xee   : > { %4042 = vsyncadd (%p4882_p12), %s539_s13, 4294954432  ;;  %s3390_s16 = smul.u32 800, %s4441_s4  ;;  %s557_s9 = scalar_lea.sflag [#allocation8], %s538_s12 }
  0xef   : > { %s560_s26 = scalar_lea.vmem [#allocation7], %s4452_s15 }
  0xf0   : > { %s4460_s24 = scalar_lea.vmem [#allocation6], %s3390_s16 }
  0xf1   : > { %4044 = dma.done.wait (%p4882_p12), %s557_s9, 12864  }
  0xf2   : > { %4046 = vsyncadd (%p4882_p12), %s557_s9, 4294954432  ;;  %s4467_s17 = scalar_lea.vmem [#allocation9], %s3390_s16  ;;  %s575_s11 = scalar_lea.sflag [#allocation11], %s538_s12 }
  0xf3   : > { %s578_s10 = scalar_lea.vmem [#allocation10], %s4452_s15 }
  0xf4   : > { %4048 = dma.done.wait (%p4882_p12), %s575_s11, 80  }
  0xf5   : > { %4050 = vsyncadd (%p4882_p12), %s575_s11, 4294967216  ;;  %v4084_v0 = vmov 0   ;;  %v693_v1 = vld [vmem:[%s533_s14] sm:$0x77]  ;;  %vm731_vm0 = vcmask 1042432   ;;  %v691_v3 = vld [vmem:[%s4832_s0 + $0x8] sm:$0xff] }
  0xf6   : > { %776 = vmatprep.mubr.bf16.mxu0 %v4084_v0  ;;  %819 = vmatprep.mubr.bf16.mxu1 %v4084_v0  ;;  %v690_v2 = vld [vmem:[%s4832_s0] sm:$0xff]  ;;  %v3034_v4 = vcombine.high %v693_v1, %v693_v1  ;;  %v3033_v5 = vcombine.low %v693_v1, %v693_v1  ;;  %v694_v6 = vld [vmem:[%s533_s14 + $0x8] sm:$0x77]  ;;  %vm727_vm1 = vcmask 48128   ;;  %vm1464_vm2 = vcmask 130048   ;;  %p674_p13 = scmp.lt.s32.totalorder %s4065_s20, 2 }
  0xf7   : > { %v3036_v7 = vcombine.high %v694_v6, %v694_v6  ;;  %v3035_v8 = vcombine.low %v694_v6, %v694_v6  ;;  %v3487_v9 = vld [vmem:[%s4460_s24 + $0x4] ss:$16 sps:$4 sm:$0xff]   ;;  %v692_v11 = vpack.c.bf16 %v691_v3, %v690_v2  ;;  %v3485_v12 = vld [vmem:[%s4460_s24] ss:$16 sps:$4 sm:$0xff]   ;;  %v3490_v13 = vld [vmem:[%s4460_s24 + $0xc] ss:$16 sps:$4 sm:$0xff]  }
  0xf8   : > { %3037 = vmatprep.subr.msk.bf16.mxu0 %vm731_vm0, %v3034_v4  ;;  %v733_v10 = vsel %vm731_vm0, %v3033_v5, 0  ;;  %v3488_v15 = vld [vmem:[%s4460_s24 + $0x8] ss:$16 sps:$4 sm:$0xff]   ;;  %v3493_v16 = vld [vmem:[%s4460_s24 + $0x24] ss:$16 sps:$4 sm:$0xff]   ;;  %s4897_s20 = smov (!%p674_p13, %s4065_s20), 2 }
  0xf9   : > { %745 = vmatpush1.bf16.msra.mxu0 %v733_v10  ;;  %3039 = vmatprep.subr.msk.bf16.mxu1 %vm731_vm0, %v3036_v7  ;;  %v739_v14 = vsel %vm731_vm0, %v3035_v8, 0  ;;  %v3496_v17 = vld [vmem:[%s4460_s24 + $0x2c] ss:$16 sps:$4 sm:$0xff]   ;;  %v3491_v18 = vld [vmem:[%s4460_s24 + $0x20] ss:$16 sps:$4 sm:$0xff]   ;;  %s3391_s27 = smul.u32 400, %s4897_s20 }
  0xfa   : > { %788 = vmatpush1.bf16.msra.mxu1 %v739_v14  ;;  %1468 = vmatprep.subr.bf16.mxu0 %v3487_v9  ;;  %v3494_v19 = vld [vmem:[%s4460_s24 + $0x28] ss:$16 sps:$4 sm:$0xff]   ;;  %v3499_v20 = vld [vmem:[%s4460_s24 + $0x44] ss:$16 sps:$4 sm:$0xff]   ;;  %v3502_v21 = vld [vmem:[%s4460_s24 + $0x4c] ss:$16 sps:$4 sm:$0xff]   ;;  %v697_v14 = vlaneseq }
  0xfb   : > { %1554 = vmatprep.subr.bf16.mxu1 %v3490_v13  ;;  %v3497_v22 = vld [vmem:[%s4460_s24 + $0x40] ss:$16 sps:$4 sm:$0xff]   ;;  %v3500_v23 = vld [vmem:[%s4460_s24 + $0x48] ss:$16 sps:$4 sm:$0xff]   ;;  %v3505_v24 = vld [vmem:[%s4460_s24 + $0x64] ss:$16 sps:$4 sm:$0xff]   ;;  %s4721_s5 = scalar_lea.vmem %s4839_s7, %s3391_s27 }
  0xfc   : > { %3038 = vmatmul.mubr.msk.bf16.vlgmr.msra.gmra.mrb[0].mxu0 %vm727_vm1, %v692_v11  ;;  %v3508_v25 = vld [vmem:[%s4460_s24 + $0x6c] ss:$16 sps:$4 sm:$0xff]   ;;  %v3503_v26 = vld [vmem:[%s4460_s24 + $0x60] ss:$16 sps:$4 sm:$0xff]   ;;  %v3506_v27 = vld [vmem:[%s4460_s24 + $0x68] ss:$16 sps:$4 sm:$0xff]  }
  0xfd   : > { %3040 = vmatmul.mubr.msk.bf16.vlgmr.msra.gmra.mrb[0].mxu1 %vm727_vm1, %v692_v11  ;;  %1469 = vmatpush1.bf16.msra.mxu0 %v3485_v12  ;;  %v3511_v28 = vld [vmem:[%s4460_s24 + $0x84] ss:$16 sps:$4 sm:$0xff]   ;;  %v3514_v29 = vld [vmem:[%s4460_s24 + $0x8c] ss:$16 sps:$4 sm:$0xff]   ;;  %v3509_v30 = vld [vmem:[%s4460_s24 + $0x80] ss:$16 sps:$4 sm:$0xff]  }
  0xfe   : > { %1555 = vmatpush1.bf16.msra.mxu1 %v3488_v15  ;;  %1470 = vmatprep.subr.bf16.mxu0 %v3493_v16  ;;  %v3512_v31 = vld [vmem:[%s4460_s24 + $0x88] ss:$16 sps:$4 sm:$0xff]   ;;  %v3517_v32 = vld [vmem:[%s4460_s24 + $0xa4] ss:$16 sps:$4 sm:$0xff]   ;;  %v3520_v33 = vld [vmem:[%s4460_s24 + $0xac] ss:$16 sps:$4 sm:$0xff]  }
  0xff   : > { %1556 = vmatprep.subr.bf16.mxu1 %v3496_v17  ;;  %v3515_v34 = vld [vmem:[%s4460_s24 + $0xa0] ss:$16 sps:$4 sm:$0xff]   ;;  %v3518_v35 = vld [vmem:[%s4460_s24 + $0xa8] ss:$16 sps:$4 sm:$0xff]   ;;  %v3523_v36 = vld [vmem:[%s4460_s24 + $0xc4] ss:$16 sps:$4 sm:$0xff]  }
 0x100   : > { %v3526_v37 = vld [vmem:[%s4460_s24 + $0xcc] ss:$16 sps:$4 sm:$0xff]   ;;  %v3521_v38 = vld [vmem:[%s4460_s24 + $0xc0] ss:$16 sps:$4 sm:$0xff]   ;;  %v3524_v39 = vld [vmem:[%s4460_s24 + $0xc8] ss:$16 sps:$4 sm:$0xff]  }
 0x101   : > { %1471 = vmatpush1.bf16.msra.mxu0 %v3491_v18  ;;  %v3529_v40 = vld [vmem:[%s4460_s24 + $0xe4] ss:$16 sps:$4 sm:$0xff]   ;;  %v3532_v41 = vld [vmem:[%s4460_s24 + $0xec] ss:$16 sps:$4 sm:$0xff]   ;;  %v3527_v42 = vld [vmem:[%s4460_s24 + $0xe0] ss:$16 sps:$4 sm:$0xff]  }
 0x102   : > { %1557 = vmatpush1.bf16.msra.mxu1 %v3494_v19  ;;  %1472 = vmatprep.subr.bf16.mxu0 %v3499_v20  ;;  %v3530_v43 = vld [vmem:[%s4460_s24 + $0xe8] ss:$16 sps:$4 sm:$0xff]   ;;  %v3535_v44 = vld [vmem:[%s4460_s24 + $0x104] ss:$16 sps:$4 sm:$0xff]   ;;  %v3538_v45 = vld [vmem:[%s4460_s24 + $0x10c] ss:$16 sps:$4 sm:$0xff]  }
 0x103   : > { %1558 = vmatprep.subr.bf16.mxu1 %v3502_v21  ;;  %v3533_v46 = vld [vmem:[%s4460_s24 + $0x100] ss:$16 sps:$4 sm:$0xff]   ;;  %v3536_v47 = vld [vmem:[%s4460_s24 + $0x108] ss:$16 sps:$4 sm:$0xff]   ;;  %v3541_v48 = vld [vmem:[%s4460_s24 + $0x124] ss:$16 sps:$4 sm:$0xff]  }
 0x104   : > { %v3539_v49 = vld [vmem:[%s4460_s24 + $0x120] ss:$16 sps:$4 sm:$0xff]   ;;  %v3544_v50 = vld [vmem:[%s4460_s24 + $0x12c] ss:$16 sps:$4 sm:$0xff]   ;;  %v3542_v51 = vld [vmem:[%s4460_s24 + $0x128] ss:$16 sps:$4 sm:$0xff]  }
 0x105   : > { %1473 = vmatpush1.bf16.msra.mxu0 %v3497_v22  ;;  %v3547_v52 = vld [vmem:[%s4460_s24 + $0x144] ss:$16 sps:$4 sm:$0xff]   ;;  %v3550_v53 = vld [vmem:[%s4460_s24 + $0x14c] ss:$16 sps:$4 sm:$0xff]   ;;  %v3545_v54 = vld [vmem:[%s4460_s24 + $0x140] ss:$16 sps:$4 sm:$0xff]  }
 0x106   : > { %1559 = vmatpush1.bf16.msra.mxu1 %v3500_v23  ;;  %1474 = vmatprep.subr.bf16.mxu0 %v3505_v24  ;;  %v3548_v55 = vld [vmem:[%s4460_s24 + $0x148] ss:$16 sps:$4 sm:$0xff]   ;;  %v3553_v56 = vld [vmem:[%s4460_s24 + $0x164] ss:$16 sps:$4 sm:$0xff]   ;;  %v3556_v57 = vld [vmem:[%s4460_s24 + $0x16c] ss:$16 sps:$4 sm:$0xff]  }
 0x107   : > { %1560 = vmatprep.subr.bf16.mxu1 %v3508_v25  ;;  %v3551_v58 = vld [vmem:[%s4460_s24 + $0x160] ss:$16 sps:$4 sm:$0xff]   ;;  %v3554_v59 = vld [vmem:[%s4460_s24 + $0x168] ss:$16 sps:$4 sm:$0xff]   ;;  %v3559_v60 = vld [vmem:[%s4460_s24 + $0x184] ss:$16 sps:$4 sm:$0xff]  }
 0x108   : > { %v3562_v61 = vld [vmem:[%s4460_s24 + $0x18c] ss:$16 sps:$4 sm:$0xff]   ;;  %v3557_v62 = vld [vmem:[%s4460_s24 + $0x180] ss:$16 sps:$4 sm:$0xff]   ;;  %v3560_v63 = vld [vmem:[%s4460_s24 + $0x188] ss:$16 sps:$4 sm:$0xff]  }
 0x109   : > { %1475 = vmatpush1.bf16.msra.mxu0 %v3503_v26  ;;  %v3565_v0 = vld [vmem:[%s4460_s24 + $0x1a4] ss:$16 sps:$4 sm:$0xff]   ;;  %v3568_v1 = vld [vmem:[%s4460_s24 + $0x1ac] ss:$16 sps:$4 sm:$0xff]   ;;  %v3563_v2 = vld [vmem:[%s4460_s24 + $0x1a0] ss:$16 sps:$4 sm:$0xff]  }
 0x10a   : > { %1561 = vmatpush1.bf16.msra.mxu1 %v3506_v27  ;;  %1476 = vmatprep.subr.bf16.mxu0 %v3511_v28  ;;  %v3566_v3 = vld [vmem:[%s4460_s24 + $0x1a8] ss:$16 sps:$4 sm:$0xff]   ;;  %v3571_v4 = vld [vmem:[%s4460_s24 + $0x1c4] ss:$16 sps:$4 sm:$0xff]   ;;  %v3574_v5 = vld [vmem:[%s4460_s24 + $0x1cc] ss:$16 sps:$4 sm:$0xff]  }
 0x10b   : > { %1562 = vmatprep.subr.bf16.mxu1 %v3514_v29  ;;  %v3569_v6 = vld [vmem:[%s4460_s24 + $0x1c0] ss:$16 sps:$4 sm:$0xff]   ;;  %v3572_v7 = vld [vmem:[%s4460_s24 + $0x1c8] ss:$16 sps:$4 sm:$0xff]   ;;  %v3577_v8 = vld [vmem:[%s4460_s24 + $0x1e4] ss:$16 sps:$4 sm:$0xff]  }
 0x10c   : > { %v3580_v9 = vld [vmem:[%s4460_s24 + $0x1ec] ss:$16 sps:$4 sm:$0xff]   ;;  %v3575_v10 = vld [vmem:[%s4460_s24 + $0x1e0] ss:$16 sps:$4 sm:$0xff]   ;;  %v3578_v11 = vld [vmem:[%s4460_s24 + $0x1e8] ss:$16 sps:$4 sm:$0xff]  }
 0x10d   : > { %1477 = vmatpush1.bf16.msra.mxu0 %v3509_v30  ;;  %v3583_v12 = vld [vmem:[%s4460_s24 + $0x204] ss:$16 sps:$4 sm:$0xff]   ;;  %v3586_v13 = vld [vmem:[%s4460_s24 + $0x20c] ss:$16 sps:$4 sm:$0xff]   ;;  %v698_v15 = vshrl.u32 %v697_v14, 7  ;;  %s586_s28 = scalar_lea.vmem [#allocation12], %s4441_s4 }
 0x10e   : > { %1563 = vmatpush1.bf16.msra.mxu1 %v3512_v31  ;;  %1478 = vmatprep.subr.bf16.mxu0 %v3517_v32  ;;  %v695_v17 = vld [vmem:[%s542_s25] sm:$0xf]  ;;  %s4884_s12 = sld [smem:[#allocation25_spill]]  ;;  %s4885_s13 = sld [smem:[#allocation26_spill]]  ;;  %vm2757_vm7 = vcmask 64512  }
 0x10f   : > { %1564 = vmatprep.subr.bf16.mxu1 %v3520_v33  ;;  %v4551_v16 = vsub.s32 0, %v698_v15  ;;  %v4555_v18 = vsub.s32 1, %v698_v15  ;;  %v4557_v19 = vsub.s32 2, %v698_v15  ;;  %v4559_v20 = vsub.s32 3, %v698_v15  ;;  %v3620_v15 = vld [vmem:[%s4460_s24 + $0x2c8] ss:$16 sps:$4 sm:$0xff]  }
 0x110   : > { %s3256_s25 = sshll.u32 %s4897_s20, 4  ;;  %s4886_s9 = sld [smem:[#allocation27_spill]] }
 0x111   : > { %1479 = vmatpush1.bf16.msra.mxu0 %v3515_v34  ;;  %v700_v21 = vrot.slane %v695_v17, %v4551_v16  ;;  %v704_v22 = vrot.slane %v695_v17, %v4555_v18  ;;  %v708_v23 = vrot.slane %v695_v17, %v4557_v19  ;;  %v712_v24 = vrot.slane %v695_v17, %v4559_v20  ;;  %v3625_v17 = vld [vmem:[%s4460_s24 + $0x2e4] ss:$16 sps:$4 sm:$0xff]  }
 0x112   : > { %1565 = vmatpush1.bf16.msra.mxu1 %v3518_v35  ;;  %1480 = vmatprep.subr.bf16.mxu0 %v3523_v36 }
 0x113   : > { %1566 = vmatprep.subr.bf16.mxu1 %v3526_v37 }
 0x115   : > { %1481 = vmatpush1.bf16.msra.mxu0 %v3521_v38 }
 0x116   : > { %1567 = vmatpush1.bf16.msra.mxu1 %v3524_v39  ;;  %1482 = vmatprep.subr.bf16.mxu0 %v3529_v40 }
 0x117   : > { %1568 = vmatprep.subr.bf16.mxu1 %v3532_v41 }
 0x119   : > { %1483 = vmatpush1.bf16.msra.mxu0 %v3527_v42 }
 0x11a   : > { %1569 = vmatpush1.bf16.msra.mxu1 %v3530_v43  ;;  %1484 = vmatprep.subr.bf16.mxu0 %v3535_v44 }
 0x11b   : > { %1570 = vmatprep.subr.bf16.mxu1 %v3538_v45 }
 0x11d   : > { %1485 = vmatpush1.bf16.msra.mxu0 %v3533_v46 }
 0x11e   : > { %1571 = vmatpush1.bf16.msra.mxu1 %v3536_v47  ;;  %1486 = vmatprep.subr.bf16.mxu0 %v3541_v48 }
 0x11f   : > { %1572 = vmatprep.subr.bf16.mxu1 %v3544_v50 }
 0x121   : > { %1487 = vmatpush1.bf16.msra.mxu0 %v3539_v49 }
 0x122   : > { %1573 = vmatpush1.bf16.msra.mxu1 %v3542_v51  ;;  %1488 = vmatprep.subr.bf16.mxu0 %v3547_v52  ;;  %v3581_v51 = vld [vmem:[%s4460_s24 + $0x200] ss:$16 sps:$4 sm:$0xff]   ;;  %v3584_v52 = vld [vmem:[%s4460_s24 + $0x208] ss:$16 sps:$4 sm:$0xff]  }
 0x123   : > { %1574 = vmatprep.subr.bf16.mxu1 %v3550_v53 }
 0x125   : > { %1489 = vmatpush1.bf16.msra.mxu0 %v3545_v54  ;;  %v3589_v54 = vld [vmem:[%s4460_s24 + $0x224] ss:$16 sps:$4 sm:$0xff]  }
 0x126   : > { %1575 = vmatpush1.bf16.msra.mxu1 %v3548_v55  ;;  %1490 = vmatprep.subr.bf16.mxu0 %v3553_v56  ;;  %v3592_v55 = vld [vmem:[%s4460_s24 + $0x22c] ss:$16 sps:$4 sm:$0xff]  }
 0x127   : > { %1576 = vmatprep.subr.bf16.mxu1 %v3556_v57  ;;  %v3587_v57 = vld [vmem:[%s4460_s24 + $0x220] ss:$16 sps:$4 sm:$0xff]  }
 0x129   : > { %1491 = vmatpush1.bf16.msra.mxu0 %v3551_v58  ;;  %v3590_v58 = vld [vmem:[%s4460_s24 + $0x228] ss:$16 sps:$4 sm:$0xff]  }
 0x12a   : > { %1577 = vmatpush1.bf16.msra.mxu1 %v3554_v59  ;;  %1492 = vmatprep.subr.bf16.mxu0 %v3559_v60  ;;  %v3595_v59 = vld [vmem:[%s4460_s24 + $0x244] ss:$16 sps:$4 sm:$0xff]   ;;  %v3598_v60 = vld [vmem:[%s4460_s24 + $0x24c] ss:$16 sps:$4 sm:$0xff]  }
 0x12b   : > { %1578 = vmatprep.subr.bf16.mxu1 %v3562_v61  ;;  %v3593_v61 = vld [vmem:[%s4460_s24 + $0x240] ss:$16 sps:$4 sm:$0xff]  }
 0x12d   : > { %1493 = vmatpush1.bf16.msra.mxu0 %v3557_v62  ;;  %v3596_v62 = vld [vmem:[%s4460_s24 + $0x248] ss:$16 sps:$4 sm:$0xff]  }
 0x12e   : > { %1579 = vmatpush1.bf16.msra.mxu1 %v3560_v63  ;;  %1494 = vmatprep.subr.bf16.mxu0 %v3565_v0  ;;  %v3601_v63 = vld [vmem:[%s4460_s24 + $0x264] ss:$16 sps:$4 sm:$0xff]   ;;  %v3604_v0 = vld [vmem:[%s4460_s24 + $0x26c] ss:$16 sps:$4 sm:$0xff]  }
 0x12f   : > { %1580 = vmatprep.subr.bf16.mxu1 %v3568_v1  ;;  %v3599_v1 = vld [vmem:[%s4460_s24 + $0x260] ss:$16 sps:$4 sm:$0xff]  }
 0x131   : > { %1495 = vmatpush1.bf16.msra.mxu0 %v3563_v2  ;;  %v3602_v2 = vld [vmem:[%s4460_s24 + $0x268] ss:$16 sps:$4 sm:$0xff]  }
 0x132   : > { %1581 = vmatpush1.bf16.msra.mxu1 %v3566_v3  ;;  %1496 = vmatprep.subr.bf16.mxu0 %v3571_v4  ;;  %v3607_v3 = vld [vmem:[%s4460_s24 + $0x284] ss:$16 sps:$4 sm:$0xff]   ;;  %v3610_v4 = vld [vmem:[%s4460_s24 + $0x28c] ss:$16 sps:$4 sm:$0xff]  }
 0x133   : > { %1582 = vmatprep.subr.bf16.mxu1 %v3574_v5  ;;  %v3605_v5 = vld [vmem:[%s4460_s24 + $0x280] ss:$16 sps:$4 sm:$0xff]  }
 0x135   : > { %1497 = vmatpush1.bf16.msra.mxu0 %v3569_v6  ;;  %v3608_v6 = vld [vmem:[%s4460_s24 + $0x288] ss:$16 sps:$4 sm:$0xff]  }
 0x136   : > { %1583 = vmatpush1.bf16.msra.mxu1 %v3572_v7  ;;  %1498 = vmatprep.subr.bf16.mxu0 %v3577_v8  ;;  %v3613_v7 = vld [vmem:[%s4460_s24 + $0x2a4] ss:$16 sps:$4 sm:$0xff]   ;;  %v3616_v8 = vld [vmem:[%s4460_s24 + $0x2ac] ss:$16 sps:$4 sm:$0xff]  }
 0x137   : > { %1584 = vmatprep.subr.bf16.mxu1 %v3580_v9  ;;  %v3611_v9 = vld [vmem:[%s4460_s24 + $0x2a0] ss:$16 sps:$4 sm:$0xff]  }
 0x139   : > { %1499 = vmatpush1.bf16.msra.mxu0 %v3575_v10  ;;  %v3614_v10 = vld [vmem:[%s4460_s24 + $0x2a8] ss:$16 sps:$4 sm:$0xff]  }
 0x13a   : > { %1585 = vmatpush1.bf16.msra.mxu1 %v3578_v11  ;;  %1511 = vmatprep.subr.bf16.mxu0 %v3583_v12  ;;  %v3619_v11 = vld [vmem:[%s4460_s24 + $0x2c4] ss:$16 sps:$4 sm:$0xff]   ;;  %v3622_v12 = vld [vmem:[%s4460_s24 + $0x2cc] ss:$16 sps:$4 sm:$0xff]  }
 0x13b   : > { %1597 = vmatprep.subr.bf16.mxu1 %v3586_v13  ;;  %v3617_v13 = vld [vmem:[%s4460_s24 + $0x2c0] ss:$16 sps:$4 sm:$0xff]  }
 0x1cf   : > { %v778_v25 = vpop.f32.mrb[0].mxu0 }
 0x1d0   : > { %v779_v26 = vadd.f32 %v778_v25, %v700_v21  ;;  %v780_v27 = vpop.f32.mrb[1].mxu0  ;;  %v821_v28 = vpop.f32.mrb[0].mxu1  ;;  %v3634_v25 = vld [vmem:[%s4460_s24 + $0x30c] ss:$16 sps:$4 sm:$0xff]  }
 0x1d1   : > { %v781_v29 = vadd.f32 %v780_v27, %v704_v22  ;;  %v782_v30 = vpop.f32.mrb[2].mxu0  ;;  %v822_v31 = vadd.f32 %v821_v28, %v708_v23  ;;  %v823_v32 = vpop.f32.mrb[1].mxu1  ;;  %v3632_v27 = vld [vmem:[%s4460_s24 + $0x308] ss:$16 sps:$4 sm:$0xff]   ;;  %v3637_v28 = vld [vmem:[%s4467_s17 + $0x4] ss:$16 sps:$4 sm:$0xff]  }
 0x1d2   : > { %v783_v33 = vadd.f32 %v782_v30, %v700_v21  ;;  %v784_v34 = vpop.f32.mrb[3].mxu0  ;;  %v824_v35 = vadd.f32 %v823_v32, %v712_v24  ;;  %v825_v36 = vpop.f32.mrb[2].mxu1  ;;  %v830_v41 = vmax.f32 %v779_v26, 0.0  ;;  %v3628_v21 = vld [vmem:[%s4460_s24 + $0x2ec] ss:$16 sps:$4 sm:$0xff]  }
 0x1d3   : > { %v785_v37 = vadd.f32 %v784_v34, %v704_v22  ;;  %v832_v38 = vmax.f32 %v822_v31, 0.0  ;;  %v826_v39 = vadd.f32 %v825_v36, %v708_v23  ;;  %v827_v40 = vpop.f32.mrb[3].mxu1  ;;  %v831_v45 = vmax.f32 %v781_v29, 0.0  ;;  %v3623_v22 = vld [vmem:[%s4460_s24 + $0x2e0] ss:$16 sps:$4 sm:$0xff]  }
 0x1d4   : > { %v834_v42 = vmax.f32 %v783_v33, 0.0  ;;  %v833_v43 = vmax.f32 %v824_v35, 0.0  ;;  %v828_v44 = vadd.f32 %v827_v40, %v712_v24  ;;  %v3626_v23 = vld [vmem:[%s4460_s24 + $0x2e8] ss:$16 sps:$4 sm:$0xff]   ;;  %v3631_v24 = vld [vmem:[%s4460_s24 + $0x304] ss:$16 sps:$4 sm:$0xff]  }
 0x1d5   : > { %v835_v46 = vmax.f32 %v785_v37, 0.0  ;;  %v836_v47 = vmax.f32 %v826_v39, 0.0  ;;  %v3629_v26 = vld [vmem:[%s4460_s24 + $0x300] ss:$16 sps:$4 sm:$0xff]   ;;  %v3640_v29 = vld [vmem:[%s4467_s17 + $0xc] ss:$16 sps:$4 sm:$0xff]  }
 0x1d6   : > { %v838_v48 = vpack.c.bf16 %v834_v42, %v830_v41  ;;  %v837_v49 = vmax.f32 %v828_v44, 0.0  ;;  %v3635_v30 = vld [vmem:[%s4467_s17] ss:$16 sps:$4 sm:$0xff]   ;;  %v3638_v31 = vld [vmem:[%s4467_s17 + $0x8] ss:$16 sps:$4 sm:$0xff]  }
 0x1d7   : > { %v839_v50 = vpack.c.bf16 %v835_v46, %v831_v45  ;;  %v4567_v53 = vpack.c.bf16 %v836_v47, %v832_v38  ;;  %v3643_v32 = vld [vmem:[%s4467_s17 + $0x24] ss:$16 sps:$4 sm:$0xff]   ;;  %v3646_v33 = vld [vmem:[%s4467_s17 + $0x2c] ss:$16 sps:$4 sm:$0xff]   ;;  %v3641_v34 = vld [vmem:[%s4467_s17 + $0x20] ss:$16 sps:$4 sm:$0xff]  }
 0x1d8   : > { %v841_v56 = vpack.c.bf16 %v837_v49, %v833_v43  ;;  %v3644_v35 = vld [vmem:[%s4467_s17 + $0x28] ss:$16 sps:$4 sm:$0xff]   ;;  %v3649_v36 = vld [vmem:[%s4467_s17 + $0x44] ss:$16 sps:$4 sm:$0xff]   ;;  %v3652_v37 = vld [vmem:[%s4467_s17 + $0x4c] ss:$16 sps:$4 sm:$0xff]  }
 0x1d9   : > { %1500 = vmatprep.mubr.bf16.mxu0 %v839_v50  ;;  %1586 = vmatprep.mubr.bf16.mxu1 %v839_v50  ;;  %v3647_v38 = vld [vmem:[%s4467_s17 + $0x40] ss:$16 sps:$4 sm:$0xff]   ;;  %v3650_v39 = vld [vmem:[%s4467_s17 + $0x48] ss:$16 sps:$4 sm:$0xff]   ;;  %v3655_v40 = vld [vmem:[%s4467_s17 + $0x64] ss:$16 sps:$4 sm:$0xff]  }
 0x1da   : > { %1501 = vmatmul.mubr.bf16.vlgmr.msra.gmra.mrb[4].mxu0 %v838_v48  ;;  %1587 = vmatmul.mubr.bf16.vlgmr.msra.gmra.mrb[4].mxu1 %v838_v48  ;;  %v3658_v41 = vld [vmem:[%s4467_s17 + $0x6c] ss:$16 sps:$4 sm:$0xff]   ;;  %v3653_v42 = vld [vmem:[%s4467_s17 + $0x60] ss:$16 sps:$4 sm:$0xff]   ;;  %v3656_v43 = vld [vmem:[%s4467_s17 + $0x68] ss:$16 sps:$4 sm:$0xff]  }
 0x1db   : > { %1512 = vmatpush1.bf16.msra.mxu0 %v3581_v51  ;;  %1598 = vmatpush1.bf16.msra.mxu1 %v3584_v52  ;;  %v3661_v44 = vld [vmem:[%s4467_s17 + $0x84] ss:$16 sps:$4 sm:$0xff]   ;;  %v3664_v45 = vld [vmem:[%s4467_s17 + $0x8c] ss:$16 sps:$4 sm:$0xff]   ;;  %v3659_v46 = vld [vmem:[%s4467_s17 + $0x80] ss:$16 sps:$4 sm:$0xff]  }
 0x1dc   : > { %1513 = vmatprep.subr.bf16.mxu0 %v3589_v54  ;;  %1599 = vmatprep.subr.bf16.mxu1 %v3592_v55  ;;  %v3662_v47 = vld [vmem:[%s4467_s17 + $0x88] ss:$16 sps:$4 sm:$0xff]   ;;  %v3667_v48 = vld [vmem:[%s4467_s17 + $0xa4] ss:$16 sps:$4 sm:$0xff]   ;;  %v3670_v49 = vld [vmem:[%s4467_s17 + $0xac] ss:$16 sps:$4 sm:$0xff]  }
 0x1dd   : > { %3141 = vmatprep.mubr.msk.bf16.mxu0 %vm1464_vm2, %v841_v56  ;;  %3142 = vmatprep.mubr.msk.bf16.mxu1 %vm1464_vm2, %v841_v56  ;;  %v3665_v50 = vld [vmem:[%s4467_s17 + $0xa0] ss:$16 sps:$4 sm:$0xff]   ;;  %v3668_v51 = vld [vmem:[%s4467_s17 + $0xa8] ss:$16 sps:$4 sm:$0xff]   ;;  %v3673_v52 = vld [vmem:[%s4467_s17 + $0xc4] ss:$16 sps:$4 sm:$0xff]  }
 0x1de   : > { %v3671_v54 = vld [vmem:[%s4467_s17 + $0xc0] ss:$16 sps:$4 sm:$0xff]   ;;  %v3674_v55 = vld [vmem:[%s4467_s17 + $0xc8] ss:$16 sps:$4 sm:$0xff]   ;;  %v3679_v56 = vld [vmem:[%s4467_s17 + $0xe4] ss:$16 sps:$4 sm:$0xff]  }
 0x1df   : > { %1514 = vmatpush1.bf16.msra.mxu0 %v3587_v57  ;;  %1600 = vmatpush1.bf16.msra.mxu1 %v3590_v58  ;;  %v3682_v57 = vld [vmem:[%s4467_s17 + $0xec] ss:$16 sps:$4 sm:$0xff]   ;;  %v3677_v58 = vld [vmem:[%s4467_s17 + $0xe0] ss:$16 sps:$4 sm:$0xff]  }
 0x1e0   : > { %1515 = vmatprep.subr.bf16.mxu0 %v3595_v59  ;;  %1601 = vmatprep.subr.bf16.mxu1 %v3598_v60  ;;  %v3680_v59 = vld [vmem:[%s4467_s17 + $0xe8] ss:$16 sps:$4 sm:$0xff]   ;;  %v3685_v60 = vld [vmem:[%s4467_s17 + $0x104] ss:$16 sps:$4 sm:$0xff]  }
 0x1e3   : > { %1516 = vmatpush1.bf16.msra.mxu0 %v3593_v61  ;;  %1602 = vmatpush1.bf16.msra.mxu1 %v3596_v62  ;;  %v3688_v61 = vld [vmem:[%s4467_s17 + $0x10c] ss:$16 sps:$4 sm:$0xff]   ;;  %v3683_v62 = vld [vmem:[%s4467_s17 + $0x100] ss:$16 sps:$4 sm:$0xff]  }
 0x1e4   : > { %1517 = vmatprep.subr.bf16.mxu0 %v3601_v63  ;;  %1603 = vmatprep.subr.bf16.mxu1 %v3604_v0  ;;  %v3686_v63 = vld [vmem:[%s4467_s17 + $0x108] ss:$16 sps:$4 sm:$0xff]   ;;  %v3691_v0 = vld [vmem:[%s4467_s17 + $0x124] ss:$16 sps:$4 sm:$0xff]  }
 0x1e7   : > { %1518 = vmatpush1.bf16.msra.mxu0 %v3599_v1  ;;  %1604 = vmatpush1.bf16.msra.mxu1 %v3602_v2  ;;  %v3694_v1 = vld [vmem:[%s4467_s17 + $0x12c] ss:$16 sps:$4 sm:$0xff]   ;;  %v3689_v2 = vld [vmem:[%s4467_s17 + $0x120] ss:$16 sps:$4 sm:$0xff]  }
 0x1e8   : > { %1519 = vmatprep.subr.bf16.mxu0 %v3607_v3  ;;  %1605 = vmatprep.subr.bf16.mxu1 %v3610_v4  ;;  %v3692_v3 = vld [vmem:[%s4467_s17 + $0x128] ss:$16 sps:$4 sm:$0xff]   ;;  %v3697_v4 = vld [vmem:[%s4467_s17 + $0x144] ss:$16 sps:$4 sm:$0xff]  }
 0x1eb   : > { %1520 = vmatpush1.bf16.msra.mxu0 %v3605_v5  ;;  %1606 = vmatpush1.bf16.msra.mxu1 %v3608_v6  ;;  %v3700_v5 = vld [vmem:[%s4467_s17 + $0x14c] ss:$16 sps:$4 sm:$0xff]   ;;  %v3695_v6 = vld [vmem:[%s4467_s17 + $0x140] ss:$16 sps:$4 sm:$0xff]  }
 0x1ec   : > { %1521 = vmatprep.subr.bf16.mxu0 %v3613_v7  ;;  %1607 = vmatprep.subr.bf16.mxu1 %v3616_v8  ;;  %v3698_v7 = vld [vmem:[%s4467_s17 + $0x148] ss:$16 sps:$4 sm:$0xff]   ;;  %v3703_v8 = vld [vmem:[%s4467_s17 + $0x164] ss:$16 sps:$4 sm:$0xff]  }
 0x1ef   : > { %1522 = vmatpush1.bf16.msra.mxu0 %v3611_v9  ;;  %1608 = vmatpush1.bf16.msra.mxu1 %v3614_v10  ;;  %v3706_v9 = vld [vmem:[%s4467_s17 + $0x16c] ss:$16 sps:$4 sm:$0xff]   ;;  %v3701_v10 = vld [vmem:[%s4467_s17 + $0x160] ss:$16 sps:$4 sm:$0xff]  }
 0x1f0   : > { %1523 = vmatprep.subr.bf16.mxu0 %v3619_v11  ;;  %1609 = vmatprep.subr.bf16.mxu1 %v3622_v12  ;;  %v3704_v11 = vld [vmem:[%s4467_s17 + $0x168] ss:$16 sps:$4 sm:$0xff]   ;;  %v3709_v12 = vld [vmem:[%s4467_s17 + $0x184] ss:$16 sps:$4 sm:$0xff]  }
 0x1f3   : > { %1524 = vmatpush1.bf16.msra.mxu0 %v3617_v13  ;;  %1610 = vmatpush1.bf16.msra.mxu1 %v3620_v15  ;;  %v3712_v13 = vld [vmem:[%s4467_s17 + $0x18c] ss:$16 sps:$4 sm:$0xff]   ;;  %v3707_v15 = vld [vmem:[%s4467_s17 + $0x180] ss:$16 sps:$4 sm:$0xff]  }
 0x1f4   : > { %1525 = vmatprep.subr.bf16.mxu0 %v3625_v17  ;;  %1611 = vmatprep.subr.bf16.mxu1 %v3628_v21  ;;  %v3710_v17 = vld [vmem:[%s4467_s17 + $0x188] ss:$16 sps:$4 sm:$0xff]   ;;  %v3715_v21 = vld [vmem:[%s4467_s17 + $0x1a4] ss:$16 sps:$4 sm:$0xff]  }
 0x1f7   : > { %1526 = vmatpush1.bf16.msra.mxu0 %v3623_v22  ;;  %1612 = vmatpush1.bf16.msra.mxu1 %v3626_v23  ;;  %v3718_v22 = vld [vmem:[%s4467_s17 + $0x1ac] ss:$16 sps:$4 sm:$0xff]   ;;  %v3713_v23 = vld [vmem:[%s4467_s17 + $0x1a0] ss:$16 sps:$4 sm:$0xff]  }
 0x1f8   : > { %1527 = vmatprep.subr.bf16.mxu0 %v3631_v24  ;;  %1613 = vmatprep.subr.bf16.mxu1 %v3634_v25  ;;  %v3716_v24 = vld [vmem:[%s4467_s17 + $0x1a8] ss:$16 sps:$4 sm:$0xff]   ;;  %v3721_v25 = vld [vmem:[%s4467_s17 + $0x1c4] ss:$16 sps:$4 sm:$0xff]  }
 0x1fb   : > { %1528 = vmatpush1.bf16.msra.mxu0 %v3629_v26  ;;  %1614 = vmatpush1.bf16.msra.mxu1 %v3632_v27  ;;  %v3724_v26 = vld [vmem:[%s4467_s17 + $0x1cc] ss:$16 sps:$4 sm:$0xff]   ;;  %v3719_v27 = vld [vmem:[%s4467_s17 + $0x1c0] ss:$16 sps:$4 sm:$0xff]  }
 0x1fc   : > { %2277 = vmatprep.subr.bf16.mxu0 %v3637_v28  ;;  %2363 = vmatprep.subr.bf16.mxu1 %v3640_v29  ;;  %v3722_v28 = vld [vmem:[%s4467_s17 + $0x1c8] ss:$16 sps:$4 sm:$0xff]   ;;  %v3727_v29 = vld [vmem:[%s4467_s17 + $0x1e4] ss:$16 sps:$4 sm:$0xff]  }
 0x1fe   : > { %1544 = vmatmul.mubr.bf16.vlgmr.msra.gmra.mrb[4].mxu0 %v4567_v53  ;;  %1630 = vmatmul.mubr.bf16.vlgmr.msra.gmra.mrb[4].mxu1 %v4567_v53  ;;  %v3676_v53 = vld [vmem:[%s4467_s17 + $0xcc] ss:$16 sps:$4 sm:$0xff]  }
 0x1ff   : > { %2278 = vmatpush1.bf16.msra.mxu0 %v3635_v30  ;;  %2364 = vmatpush1.bf16.msra.mxu1 %v3638_v31  ;;  %v3730_v30 = vld [vmem:[%s4467_s17 + $0x1ec] ss:$16 sps:$4 sm:$0xff]   ;;  %v3725_v31 = vld [vmem:[%s4467_s17 + $0x1e0] ss:$16 sps:$4 sm:$0xff]  }
 0x200   : > { %2279 = vmatprep.subr.bf16.mxu0 %v3643_v32  ;;  %2365 = vmatprep.subr.bf16.mxu1 %v3646_v33  ;;  %v3728_v32 = vld [vmem:[%s4467_s17 + $0x1e8] ss:$16 sps:$4 sm:$0xff]   ;;  %v3733_v33 = vld [vmem:[%s4467_s17 + $0x204] ss:$16 sps:$4 sm:$0xff]  }
 0x203   : > { %2280 = vmatpush1.bf16.msra.mxu0 %v3641_v34  ;;  %2366 = vmatpush1.bf16.msra.mxu1 %v3644_v35  ;;  %v3736_v34 = vld [vmem:[%s4467_s17 + $0x20c] ss:$16 sps:$4 sm:$0xff]  }
 0x204   : > { %2281 = vmatprep.subr.bf16.mxu0 %v3649_v36  ;;  %2367 = vmatprep.subr.bf16.mxu1 %v3652_v37  ;;  %v942_v35 = vld [vmem:[%s560_s26] sm:$0xf]  ;;  %s687_s26 = scalar_lea.vmem %s4886_s9, %s3256_s25 }
 0x205   : > { %v947_v36 = vrot.slane %v942_v35, %v4551_v16  ;;  %v955_v37 = vrot.slane %v942_v35, %v4557_v19 }
 0x207   : > { %2282 = vmatpush1.bf16.msra.mxu0 %v3647_v38  ;;  %2368 = vmatpush1.bf16.msra.mxu1 %v3650_v39  ;;  %v951_v38 = vrot.slane %v942_v35, %v4555_v18  ;;  %v959_v39 = vrot.slane %v942_v35, %v4559_v20  ;;  %v3775_v35 = vld [vmem:[%s4467_s17 + $0x2e4] ss:$16 sps:$4 sm:$0xff]  }
 0x208   : > { %2283 = vmatprep.subr.bf16.mxu0 %v3655_v40  ;;  %2369 = vmatprep.subr.bf16.mxu1 %v3658_v41 }
 0x20b   : > { %2284 = vmatpush1.bf16.msra.mxu0 %v3653_v42  ;;  %2370 = vmatpush1.bf16.msra.mxu1 %v3656_v43 }
 0x20c   : > { %2285 = vmatprep.subr.bf16.mxu0 %v3661_v44  ;;  %2371 = vmatprep.subr.bf16.mxu1 %v3664_v45 }
 0x20f   : > { %2286 = vmatpush1.bf16.msra.mxu0 %v3659_v46  ;;  %2372 = vmatpush1.bf16.msra.mxu1 %v3662_v47 }
 0x210   : > { %2287 = vmatprep.subr.bf16.mxu0 %v3667_v48  ;;  %2373 = vmatprep.subr.bf16.mxu1 %v3670_v49 }
 0x213   : > { %2288 = vmatpush1.bf16.msra.mxu0 %v3665_v50  ;;  %2374 = vmatpush1.bf16.msra.mxu1 %v3668_v51 }
 0x214   : > { %2289 = vmatprep.subr.bf16.mxu0 %v3673_v52  ;;  %2375 = vmatprep.subr.bf16.mxu1 %v3676_v53 }
 0x217   : > { %2290 = vmatpush1.bf16.msra.mxu0 %v3671_v54  ;;  %2376 = vmatpush1.bf16.msra.mxu1 %v3674_v55 }
 0x218   : > { %2291 = vmatprep.subr.bf16.mxu0 %v3679_v56  ;;  %2377 = vmatprep.subr.bf16.mxu1 %v3682_v57 }
 0x21b   : > { %2292 = vmatpush1.bf16.msra.mxu0 %v3677_v58  ;;  %2378 = vmatpush1.bf16.msra.mxu1 %v3680_v59 }
 0x21c   : > { %2293 = vmatprep.subr.bf16.mxu0 %v3685_v60  ;;  %2379 = vmatprep.subr.bf16.mxu1 %v3688_v61 }
 0x21f   : > { %2294 = vmatpush1.bf16.msra.mxu0 %v3683_v62  ;;  %2380 = vmatpush1.bf16.msra.mxu1 %v3686_v63 }
 0x220   : > { %2295 = vmatprep.subr.bf16.mxu0 %v3691_v0  ;;  %2381 = vmatprep.subr.bf16.mxu1 %v3694_v1 }
 0x223   : > { %2296 = vmatpush1.bf16.msra.mxu0 %v3689_v2  ;;  %2382 = vmatpush1.bf16.msra.mxu1 %v3692_v3 }
 0x224   : > { %2297 = vmatprep.subr.bf16.mxu0 %v3697_v4  ;;  %2383 = vmatprep.subr.bf16.mxu1 %v3700_v5  ;;  %v3731_v4 = vld [vmem:[%s4467_s17 + $0x200] ss:$16 sps:$4 sm:$0xff]   ;;  %v3734_v5 = vld [vmem:[%s4467_s17 + $0x208] ss:$16 sps:$4 sm:$0xff]  }
 0x227   : > { %2298 = vmatpush1.bf16.msra.mxu0 %v3695_v6  ;;  %2384 = vmatpush1.bf16.msra.mxu1 %v3698_v7  ;;  %v3739_v6 = vld [vmem:[%s4467_s17 + $0x224] ss:$16 sps:$4 sm:$0xff]   ;;  %v3742_v7 = vld [vmem:[%s4467_s17 + $0x22c] ss:$16 sps:$4 sm:$0xff]  }
 0x228   : > { %2299 = vmatprep.subr.bf16.mxu0 %v3703_v8  ;;  %2385 = vmatprep.subr.bf16.mxu1 %v3706_v9  ;;  %v3737_v8 = vld [vmem:[%s4467_s17 + $0x220] ss:$16 sps:$4 sm:$0xff]   ;;  %v3740_v9 = vld [vmem:[%s4467_s17 + $0x228] ss:$16 sps:$4 sm:$0xff]  }
 0x22b   : > { %2300 = vmatpush1.bf16.msra.mxu0 %v3701_v10  ;;  %2386 = vmatpush1.bf16.msra.mxu1 %v3704_v11  ;;  %v3745_v10 = vld [vmem:[%s4467_s17 + $0x244] ss:$16 sps:$4 sm:$0xff]   ;;  %v3748_v11 = vld [vmem:[%s4467_s17 + $0x24c] ss:$16 sps:$4 sm:$0xff]  }
 0x22c   : > { %2301 = vmatprep.subr.bf16.mxu0 %v3709_v12  ;;  %2387 = vmatprep.subr.bf16.mxu1 %v3712_v13  ;;  %v3743_v12 = vld [vmem:[%s4467_s17 + $0x240] ss:$16 sps:$4 sm:$0xff]   ;;  %v3746_v13 = vld [vmem:[%s4467_s17 + $0x248] ss:$16 sps:$4 sm:$0xff]  }
 0x22f   : > { %2302 = vmatpush1.bf16.msra.mxu0 %v3707_v15  ;;  %2388 = vmatpush1.bf16.msra.mxu1 %v3710_v17  ;;  %v3751_v15 = vld [vmem:[%s4467_s17 + $0x264] ss:$16 sps:$4 sm:$0xff]   ;;  %v3754_v17 = vld [vmem:[%s4467_s17 + $0x26c] ss:$16 sps:$4 sm:$0xff]  }
 0x230   : > { %2303 = vmatprep.subr.bf16.mxu0 %v3715_v21  ;;  %2389 = vmatprep.subr.bf16.mxu1 %v3718_v22  ;;  %v3749_v21 = vld [vmem:[%s4467_s17 + $0x260] ss:$16 sps:$4 sm:$0xff]   ;;  %v3752_v22 = vld [vmem:[%s4467_s17 + $0x268] ss:$16 sps:$4 sm:$0xff]  }
 0x233   : > { %2304 = vmatpush1.bf16.msra.mxu0 %v3713_v23  ;;  %2390 = vmatpush1.bf16.msra.mxu1 %v3716_v24  ;;  %v3757_v23 = vld [vmem:[%s4467_s17 + $0x284] ss:$16 sps:$4 sm:$0xff]   ;;  %v3760_v24 = vld [vmem:[%s4467_s17 + $0x28c] ss:$16 sps:$4 sm:$0xff]  }
 0x234   : > { %2305 = vmatprep.subr.bf16.mxu0 %v3721_v25  ;;  %2391 = vmatprep.subr.bf16.mxu1 %v3724_v26  ;;  %v3755_v25 = vld [vmem:[%s4467_s17 + $0x280] ss:$16 sps:$4 sm:$0xff]   ;;  %v3758_v26 = vld [vmem:[%s4467_s17 + $0x288] ss:$16 sps:$4 sm:$0xff]  }
 0x237   : > { %2306 = vmatpush1.bf16.msra.mxu0 %v3719_v27  ;;  %2392 = vmatpush1.bf16.msra.mxu1 %v3722_v28  ;;  %v3763_v27 = vld [vmem:[%s4467_s17 + $0x2a4] ss:$16 sps:$4 sm:$0xff]   ;;  %v3766_v28 = vld [vmem:[%s4467_s17 + $0x2ac] ss:$16 sps:$4 sm:$0xff]  }
 0x238   : > { %2307 = vmatprep.subr.bf16.mxu0 %v3727_v29  ;;  %2393 = vmatprep.subr.bf16.mxu1 %v3730_v30  ;;  %v3761_v29 = vld [vmem:[%s4467_s17 + $0x2a0] ss:$16 sps:$4 sm:$0xff]   ;;  %v3764_v30 = vld [vmem:[%s4467_s17 + $0x2a8] ss:$16 sps:$4 sm:$0xff]  }
 0x23b   : > { %2308 = vmatpush1.bf16.msra.mxu0 %v3725_v31  ;;  %2394 = vmatpush1.bf16.msra.mxu1 %v3728_v32  ;;  %v3769_v31 = vld [vmem:[%s4467_s17 + $0x2c4] ss:$16 sps:$4 sm:$0xff]   ;;  %v3772_v32 = vld [vmem:[%s4467_s17 + $0x2cc] ss:$16 sps:$4 sm:$0xff]  }
 0x23c   : > { %2320 = vmatprep.subr.bf16.mxu0 %v3733_v33  ;;  %2406 = vmatprep.subr.bf16.mxu1 %v3736_v34  ;;  %v3767_v33 = vld [vmem:[%s4467_s17 + $0x2c0] ss:$16 sps:$4 sm:$0xff]   ;;  %v3770_v34 = vld [vmem:[%s4467_s17 + $0x2c8] ss:$16 sps:$4 sm:$0xff]  }
 0x2d1   : > { %v1545_v40 = vpop.f32.mrb[4].mxu0  ;;  %v1631_v41 = vpop.f32.mrb[4].mxu1 }
 0x2d2   : > { %v3354_v42 = vadd.f32 %v1545_v40, %v947_v36  ;;  %v3358_v43 = vadd.f32 %v1631_v41, %v955_v37  ;;  %v1547_v44 = vpop.f32.mrb[5].mxu0  ;;  %v1633_v45 = vpop.f32.mrb[5].mxu1  ;;  %v3784_v40 = vld [vmem:[%s4467_s17 + $0x30c] ss:$16 sps:$4 sm:$0xff]   ;;  %v2473_v41 = vld [vmem:[%s4721_s5 + $0x80] sm:$0xff] }
 0x2d3   : > { %v3355_v46 = vadd.f32 %v1547_v44, %v951_v38  ;;  %v3359_v47 = vadd.f32 %v1633_v45, %v959_v39  ;;  %v1549_v48 = vpop.f32.mrb[6].mxu0  ;;  %v1635_v49 = vpop.f32.mrb[6].mxu1  ;;  %v3782_v44 = vld [vmem:[%s4467_s17 + $0x308] ss:$16 sps:$4 sm:$0xff]   ;;  %v2489_v45 = vld [vmem:[%s4721_s5 + $0x100] sm:$0xff] }
 0x2d4   : > { %v3356_v50 = vadd.f32 %v1549_v48, %v947_v36  ;;  %v3360_v51 = vadd.f32 %v1635_v49, %v955_v37  ;;  %v1551_v52 = vpop.f32.mrb[7].mxu0  ;;  %v1637_v53 = vpop.f32.mrb[7].mxu1  ;;  %v1640_v56 = vmax.f32 %v3354_v42, 0.0  ;;  %v1642_v57 = vmax.f32 %v3358_v43, 0.0  ;;  %v3778_v36 = vld [vmem:[%s4467_s17 + $0x2ec] ss:$16 sps:$4 sm:$0xff]  }
 0x2d5   : > { %v3357_v54 = vadd.f32 %v1551_v52, %v951_v38  ;;  %v3361_v55 = vadd.f32 %v1637_v53, %v959_v39  ;;  %v1641_v60 = vmax.f32 %v3355_v46, 0.0  ;;  %v1643_v61 = vmax.f32 %v3359_v47, 0.0  ;;  %v3773_v37 = vld [vmem:[%s4467_s17 + $0x2e0] ss:$16 sps:$4 sm:$0xff]   ;;  %v3776_v38 = vld [vmem:[%s4467_s17 + $0x2e8] ss:$16 sps:$4 sm:$0xff]  }
 0x2d6   : > { %v1644_v58 = vmax.f32 %v3356_v50, 0.0  ;;  %v1646_v59 = vmax.f32 %v3360_v51, 0.0  ;;  %v3781_v39 = vld [vmem:[%s4467_s17 + $0x304] ss:$16 sps:$4 sm:$0xff]   ;;  %v2474_v42 = vld [vmem:[%s4721_s5 + $0x88] sm:$0xff]  ;;  %v2476_v51 = vld [vmem:[%s4721_s5 + $0x98] sm:$0xff] }
 0x2d7   : > { %v1645_v62 = vmax.f32 %v3357_v54, 0.0  ;;  %v1647_v63 = vmax.f32 %v3361_v55, 0.0  ;;  %v3779_v43 = vld [vmem:[%s4467_s17 + $0x300] ss:$16 sps:$4 sm:$0xff]   ;;  %v2490_v46 = vld [vmem:[%s4721_s5 + $0x108] sm:$0xff]  ;;  %v3295_v47 = vpack.c.bf16 %v2474_v42, %v2473_v41  ;;  %v4085_v55 = vmov 0.0|0.0  }
 0x2d8   : > { %v1648_v0 = vpack.c.bf16 %v1644_v58, %v1640_v56  ;;  %v4677_v1 = vpack.c.bf16 %v1646_v59, %v1642_v57  ;;  %v2457_v48 = vld [vmem:[%s4721_s5] sm:$0xff]  ;;  %v2458_v49 = vld [vmem:[%s4721_s5 + $0x8] sm:$0xff]  ;;  %v2475_v50 = vld [vmem:[%s4721_s5 + $0x90] sm:$0xff]  ;;  %v3328_v52 = vpack.c.bf16 %v2490_v46, %v2489_v45 }
 0x2d9   : > { %v1649_v2 = vpack.c.bf16 %v1645_v62, %v1641_v60  ;;  %v1651_v3 = vpack.c.bf16 %v1647_v63, %v1643_v61  ;;  %v3297_v53 = vpack.c.bf16 %v2458_v49, %v2457_v48  ;;  %v2491_v54 = vld [vmem:[%s4721_s5 + $0x110] sm:$0xff]  ;;  %v2492_v56 = vld [vmem:[%s4721_s5 + $0x118] sm:$0xff]  ;;  %v3299_v57 = vpack.c.bf16 %v2476_v51, %v2475_v50  ;;  %v2477_v60 = vld [vmem:[%s4721_s5 + $0xa0] sm:$0xff] }
 0x2da   : > { %v2459_v58 = vld [vmem:[%s4721_s5 + $0x10] sm:$0xff]  ;;  %v2460_v59 = vld [vmem:[%s4721_s5 + $0x18] sm:$0xff]  ;;  %v2478_v61 = vld [vmem:[%s4721_s5 + $0xa8] sm:$0xff]  ;;  %v3331_v62 = vpack.c.bf16 %v2492_v56, %v2491_v54 }
 0x2db   : > { %2309 = vmatprep.mubr.bf16.mxu0 %v1649_v2  ;;  %2395 = vmatprep.mubr.bf16.mxu1 %v1649_v2  ;;  %v3301_v63 = vpack.c.bf16 %v2460_v59, %v2459_v58  ;;  %v2494_v2 = vld [vmem:[%s4721_s5 + $0x128] sm:$0xff]  ;;  %v2501_v41 = vld [vmem:[%s4721_s5 + $0x160] sm:$0xff]  ;;  %v2504_v49 = vld [vmem:[%s4721_s5 + $0x178] sm:$0xff] }
 0x2dc   : > { %2310 = vmatmul.mubr.bf16.vlgmr.msra.gmra.mrb[8].mxu0 %v1648_v0  ;;  %2396 = vmatmul.mubr.bf16.vlgmr.msra.gmra.mrb[8].mxu1 %v1648_v0  ;;  %v2493_v0 = vld [vmem:[%s4721_s5 + $0x120] sm:$0xff]  ;;  %v2502_v42 = vld [vmem:[%s4721_s5 + $0x168] sm:$0xff]  ;;  %v2487_v51 = vld [vmem:[%s4721_s5 + $0xf0] sm:$0xff] }
 0x2dd   : > { %2321 = vmatpush1.bf16.msra.mxu0 %v3731_v4  ;;  %2407 = vmatpush1.bf16.msra.mxu1 %v3734_v5  ;;  %v2461_v4 = vld [vmem:[%s4721_s5 + $0x20] sm:$0xff]  ;;  %v2462_v5 = vld [vmem:[%s4721_s5 + $0x28] sm:$0xff]  ;;  %v2471_v54 = vld [vmem:[%s4721_s5 + $0x70] sm:$0xff] }
 0x2de   : > { %3243 = vmatprep.mubr.msk.bf16.mxu0 %vm1464_vm2, %v1651_v3  ;;  %3244 = vmatprep.mubr.msk.bf16.mxu1 %vm1464_vm2, %v1651_v3  ;;  %v3303_v3 = vpack.c.bf16 %v2478_v61, %v2477_v60  ;;  %v2469_v45 = vld [vmem:[%s4721_s5 + $0x60] sm:$0xff]  ;;  %v2470_v46 = vld [vmem:[%s4721_s5 + $0x68] sm:$0xff]  ;;  %v2472_v56 = vld [vmem:[%s4721_s5 + $0x78] sm:$0xff] }
 0x2df   : > { %2322 = vmatprep.subr.bf16.mxu0 %v3739_v6  ;;  %2408 = vmatprep.subr.bf16.mxu1 %v3742_v7  ;;  %v2479_v6 = vld [vmem:[%s4721_s5 + $0xb0] sm:$0xff]  ;;  %v3334_v7 = vpack.c.bf16 %v2494_v2, %v2493_v0  ;;  %v3321_v48 = vpack.c.bf16 %v2470_v46, %v2469_v45  ;;  %v3325_v58 = vpack.c.bf16 %v2472_v56, %v2471_v54  ;;  %v2506_v59 = vld [vmem:[%s4721_s5 + $0x188] sm:$0xff] }
 0x2e0   : > { %v1752_v61 = vld [vmem:[%s578_s10] sm:$0xf] }
 0x2e1   : > { %2323 = vmatpush1.bf16.msra.mxu0 %v3737_v8  ;;  %2409 = vmatpush1.bf16.msra.mxu1 %v3740_v9  ;;  %v3305_v8 = vpack.c.bf16 %v2462_v5, %v2461_v4  ;;  %v2495_v9 = vld [vmem:[%s4721_s5 + $0x130] sm:$0xff]  ;;  %v1761_v0 = vrot.slane %v1752_v61, %v4555_v18  ;;  %v1769_v2 = vrot.slane %v1752_v61, %v4559_v20 }
 0x2e2   : > { %2324 = vmatprep.subr.bf16.mxu0 %v3745_v10  ;;  %2410 = vmatprep.subr.bf16.mxu1 %v3748_v11  ;;  %v2496_v10 = vld [vmem:[%s4721_s5 + $0x138] sm:$0xff] }
 0x2e5   : > { %2325 = vmatpush1.bf16.msra.mxu0 %v3743_v12  ;;  %2411 = vmatpush1.bf16.msra.mxu1 %v3746_v13  ;;  %v2463_v12 = vld [vmem:[%s4721_s5 + $0x30] sm:$0xff]  ;;  %v2464_v13 = vld [vmem:[%s4721_s5 + $0x38] sm:$0xff] }
 0x2e6   : > { %2326 = vmatprep.subr.bf16.mxu0 %v3751_v15  ;;  %2412 = vmatprep.subr.bf16.mxu1 %v3754_v17  ;;  %v2481_v15 = vld [vmem:[%s4721_s5 + $0xc0] sm:$0xff]  ;;  %v2482_v17 = vld [vmem:[%s4721_s5 + $0xc8] sm:$0xff] }
 0x2e9   : > { %2327 = vmatpush1.bf16.msra.mxu0 %v3749_v21  ;;  %2413 = vmatpush1.bf16.msra.mxu1 %v3752_v22  ;;  %v3337_v21 = vpack.c.bf16 %v2496_v10, %v2495_v9  ;;  %v3309_v22 = vpack.c.bf16 %v2464_v13, %v2463_v12 }
 0x2ea   : > { %2328 = vmatprep.subr.bf16.mxu0 %v3757_v23  ;;  %2414 = vmatprep.subr.bf16.mxu1 %v3760_v24  ;;  %v2497_v23 = vld [vmem:[%s4721_s5 + $0x140] sm:$0xff]  ;;  %v2498_v24 = vld [vmem:[%s4721_s5 + $0x148] sm:$0xff] }
 0x2ed   : > { %2329 = vmatpush1.bf16.msra.mxu0 %v3755_v25  ;;  %2415 = vmatpush1.bf16.msra.mxu1 %v3758_v26  ;;  %v3311_v25 = vpack.c.bf16 %v2482_v17, %v2481_v15  ;;  %v2465_v26 = vld [vmem:[%s4721_s5 + $0x40] sm:$0xff] }
 0x2ee   : > { %2330 = vmatprep.subr.bf16.mxu0 %v3763_v27  ;;  %2416 = vmatprep.subr.bf16.mxu1 %v3766_v28  ;;  %v2466_v27 = vld [vmem:[%s4721_s5 + $0x48] sm:$0xff]  ;;  %v2483_v28 = vld [vmem:[%s4721_s5 + $0xd0] sm:$0xff] }
 0x2f1   : > { %2331 = vmatpush1.bf16.msra.mxu0 %v3761_v29  ;;  %2417 = vmatpush1.bf16.msra.mxu1 %v3764_v30  ;;  %v2484_v29 = vld [vmem:[%s4721_s5 + $0xd8] sm:$0xff]  ;;  %v3340_v30 = vpack.c.bf16 %v2498_v24, %v2497_v23 }
 0x2f2   : > { %2332 = vmatprep.subr.bf16.mxu0 %v3769_v31  ;;  %2418 = vmatprep.subr.bf16.mxu1 %v3772_v32  ;;  %v3313_v31 = vpack.c.bf16 %v2466_v27, %v2465_v26  ;;  %v2499_v32 = vld [vmem:[%s4721_s5 + $0x150] sm:$0xff] }
 0x2f5   : > { %2333 = vmatpush1.bf16.msra.mxu0 %v3767_v33  ;;  %2419 = vmatpush1.bf16.msra.mxu1 %v3770_v34  ;;  %v2500_v33 = vld [vmem:[%s4721_s5 + $0x158] sm:$0xff]  ;;  %v3315_v34 = vpack.c.bf16 %v2484_v29, %v2483_v28  ;;  %v3245_v28 = vld [vmem:[%s586_s28] ss:$0 sm:$0xff] }
 0x2f6   : > { %2334 = vmatprep.subr.bf16.mxu0 %v3775_v35  ;;  %2420 = vmatprep.subr.bf16.mxu1 %v3778_v36  ;;  %v2467_v35 = vld [vmem:[%s4721_s5 + $0x50] sm:$0xff]  ;;  %v2468_v36 = vld [vmem:[%s4721_s5 + $0x58] sm:$0xff] }
 0x2f9   : > { %2335 = vmatpush1.bf16.msra.mxu0 %v3773_v37  ;;  %2421 = vmatpush1.bf16.msra.mxu1 %v3776_v38  ;;  %v2485_v37 = vld [vmem:[%s4721_s5 + $0xe0] sm:$0xff]  ;;  %v2486_v38 = vld [vmem:[%s4721_s5 + $0xe8] sm:$0xff] }
 0x2fa   : > { %2336 = vmatprep.subr.bf16.mxu0 %v3781_v39  ;;  %2422 = vmatprep.subr.bf16.mxu1 %v3784_v40  ;;  %v3343_v39 = vpack.c.bf16 %v2500_v33, %v2499_v32  ;;  %v3317_v40 = vpack.c.bf16 %v2468_v36, %v2467_v35  ;;  %v3248_v35 = vld [vmem:[%s4884_s12] ss:$0 sm:$0xff] }
 0x2fd   : > { %2337 = vmatpush1.bf16.msra.mxu0 %v3779_v43  ;;  %2423 = vmatpush1.bf16.msra.mxu1 %v3782_v44  ;;  %v3319_v43 = vpack.c.bf16 %v2486_v38, %v2485_v37  ;;  %v3346_v44 = vpack.c.bf16 %v2502_v42, %v2501_v41 }
 0x2fe   : > { %3327 = vmatprep.subr.bf16.mxu1 %v4085_v55  ;;  %3296 = vmatprep.subr.bf16.mxu0 %v3295_v47  ;;  %v2503_v47 = vld [vmem:[%s4721_s5 + $0x170] sm:$0xff] }
 0x2ff   : > { %v3349_v50 = vpack.c.bf16 %v2504_v49, %v2503_v47 }
 0x300   : > { %2353 = vmatmul.mubr.bf16.vlgmr.msra.gmra.mrb[8].mxu0 %v4677_v1  ;;  %2439 = vmatmul.mubr.bf16.vlgmr.msra.gmra.mrb[8].mxu1 %v4677_v1  ;;  %v2480_v1 = vld [vmem:[%s4721_s5 + $0xb8] sm:$0xff] }
 0x301   : > { %3329 = vmatpush1.bf16.msra.mxu1 %v3328_v52  ;;  %3298 = vmatpush3.bf16.msra.mxu0 %v3297_v53  ;;  %v3307_v11 = vpack.c.bf16 %v2480_v1, %v2479_v6  ;;  %v2488_v52 = vld [vmem:[%s4721_s5 + $0xf8] sm:$0xff] }
 0x302   : > { %3330 = vmatprep.subr.bf16.mxu1 %v4085_v55  ;;  %3300 = vmatprep.subr.bf16.mxu0 %v3299_v57  ;;  %v3323_v53 = vpack.c.bf16 %v2488_v52, %v2487_v51  ;;  %v2505_v57 = vld [vmem:[%s4721_s5 + $0x180] sm:$0xff] }
 0x303   : > { %v3352_v60 = vpack.c.bf16 %v2506_v59, %v2505_v57 }
 0x305   : > { %3332 = vmatpush1.bf16.msra.mxu1 %v3331_v62  ;;  %3302 = vmatpush3.bf16.msra.mxu0 %v3301_v63  ;;  %v1757_v62 = vrot.slane %v1752_v61, %v4551_v16  ;;  %v1765_v63 = vrot.slane %v1752_v61, %v4557_v19 }
 0x306   : > { %3333 = vmatprep.subr.bf16.mxu1 %v4085_v55  ;;  %3304 = vmatprep.subr.bf16.mxu0 %v3303_v3 }
 0x309   : > { %3335 = vmatpush1.bf16.msra.mxu1 %v3334_v7  ;;  %3306 = vmatpush3.bf16.msra.mxu0 %v3305_v8 }
 0x30a   : > { %3336 = vmatprep.subr.bf16.mxu1 %v4085_v55  ;;  %3308 = vmatprep.subr.bf16.mxu0 %v3307_v11 }
 0x30d   : > { %3338 = vmatpush1.bf16.msra.mxu1 %v3337_v21  ;;  %3310 = vmatpush3.bf16.msra.mxu0 %v3309_v22 }
 0x30e   : > { %3339 = vmatprep.subr.bf16.mxu1 %v4085_v55  ;;  %3312 = vmatprep.subr.bf16.mxu0 %v3311_v25 }
 0x311   : > { %3341 = vmatpush1.bf16.msra.mxu1 %v3340_v30  ;;  %3314 = vmatpush3.bf16.msra.mxu0 %v3313_v31 }
 0x312   : > { %3342 = vmatprep.subr.bf16.mxu1 %v4085_v55  ;;  %3316 = vmatprep.subr.bf16.mxu0 %v3315_v34 }
 0x315   : > { %3344 = vmatpush1.bf16.msra.mxu1 %v3343_v39  ;;  %3318 = vmatpush3.bf16.msra.mxu0 %v3317_v40 }
 0x316   : > { %3345 = vmatprep.subr.bf16.mxu1 %v4085_v55  ;;  %3320 = vmatprep.subr.bf16.mxu0 %v3319_v43 }
 0x319   : > { %3347 = vmatpush1.bf16.msra.mxu1 %v3346_v44  ;;  %3322 = vmatpush3.bf16.msra.mxu0 %v3321_v48 }
 0x31a   : > { %3348 = vmatprep.subr.bf16.mxu1 %v4085_v55  ;;  %3324 = vmatprep.subr.bf16.mxu0 %v3323_v53 }
 0x31d   : > { %3350 = vmatpush1.bf16.msra.mxu1 %v3349_v50  ;;  %3326 = vmatpush3.bf16.msra.mxu0 %v3325_v58 }
 0x31e   : > { %3351 = vmatprep.subr.bf16.mxu1 %v4085_v55 }
 0x321   : > { %3353 = vmatpush1.bf16.msra.mxu1 %v3352_v60 }
 0x3d3   : > { %v2354_v3 = vpop.f32.mrb[8].mxu0  ;;  %v2440_v4 = vpop.f32.mrb[8].mxu1 }
 0x3d4   : > { %v3362_v5 = vadd.f32 %v2354_v3, %v1757_v62  ;;  %v3366_v55 = vadd.f32 %v2440_v4, %v1765_v63  ;;  %v2356_v6 = vpop.f32.mrb[9].mxu0  ;;  %v2442_v1 = vpop.f32.mrb[9].mxu1 }
 0x3d5   : > { %v3363_v7 = vadd.f32 %v2356_v6, %v1761_v0  ;;  %v3367_v8 = vadd.f32 %v2442_v1, %v1769_v2  ;;  %v2358_v9 = vpop.f32.mrb[10].mxu0  ;;  %v2444_v10 = vpop.f32.mrb[10].mxu1 }
 0x3d6   : > { %v2360_v11 = vpop.f32.mrb[11].mxu0  ;;  %v2446_v12 = vpop.f32.mrb[11].mxu1  ;;  %v2449_v17 = vmax.f32 %v3362_v5, 0.0  ;;  %v2451_v18 = vmax.f32 %v3366_v55, 0.0  ;;  %v3364_v21 = vadd.f32 %v2358_v9, %v1757_v62  ;;  %v3368_v20 = vadd.f32 %v2444_v10, %v1765_v63  ;;  %v3249_v5 = vld [vmem:[%s4885_s13] ss:$0 sm:$0xff] }
 0x3d7   : > { %v2450_v13 = vmax.f32 %v3363_v7, 0.0  ;;  %v2452_v16 = vmax.f32 %v3367_v8, 0.0  ;;  %v3365_v15 = vadd.f32 %v2360_v11, %v1761_v0  ;;  %v3369_v19 = vadd.f32 %v2446_v12, %v1769_v2 }
 0x3d8   : > { %v2453_v24 = vmax.f32 %v3364_v21, 0.0  ;;  %v2455_v25 = vmax.f32 %v3368_v20, 0.0 }
 0x3d9   : > { %v2454_v22 = vmax.f32 %v3365_v15, 0.0  ;;  %v2456_v23 = vmax.f32 %v3369_v19, 0.0  ;;  %2584 = vmatprep.mubr.f32.mxu0 %v2450_v13  ;;  %3246 = vmatprep.mubr.msk.f32.mxu1 %vm1464_vm2, %v2452_v16 }
 0x3da   : > { %2585 = vmatmul.mubr.f32.vlgmr.msra.gmra.mrb[12].mxu0 %v2449_v17  ;;  %2660 = vmatmul.mubr.f32.vlgmr.msra.gmra.mrb[12].mxu1 %v2451_v18 }
 0x3db   : > { %2589 = vmatprep.mubr.f32.mxu0 %v2454_v22  ;;  %3247 = vmatprep.mubr.msk.f32.mxu1 %vm1464_vm2, %v2456_v23 }
 0x3de   : > { %2590 = vmatmul.mubr.f32.gmra.mrb[14].mxu0 %v2453_v24  ;;  %2665 = vmatmul.mubr.f32.gmra.mrb[14].mxu1 %v2455_v25 }
 0x4ad   : > { %v3289_v26 = vpop.f32.mrb[12].mxu0  ;;  %v2661_v27 = vpop.f32.mrb[12].mxu1 }
 0x4ae   : > { %v3290_v29 = vpop.f32.mrb[13].mxu0  ;;  %v2663_v30 = vpop.f32.mrb[13].mxu1 }
 0x4af   : > { %v3291_v31 = vadd.f32 %v3290_v29, %v3289_v26 }
 0x4b1   : > { %v2587_v32 = vadd.f32 %v3291_v31, %v3245_v28  ;;  %v3292_v33 = vpop.f32.mrb[14].mxu0  ;;  %v2666_v34 = vpop.f32.mrb[14].mxu1  ;;  %v2753_v31 = vand.u32 127, %v697_v14 }
 0x4b2   : > { %v3293_v36 = vpop.f32.mrb[15].mxu0  ;;  %v2668_v37 = vpop.f32.mrb[15].mxu1 }
 0x4b3   : > { %v4798_v38 = vadd.f32 %v2661_v27, %v2587_v32  ;;  %v3294_v39 = vadd.f32 %v3293_v36, %v3292_v33  ;;  %vm2754_vm6 = vcmp.lt.s32.totalorder %v2753_v31, 4 }
 0x4b5   : > { %v2678_v40 = vsub.f32 %v3248_v35, %v4798_v38  ;;  %v2592_v41 = vadd.f32 %v3294_v39, %v3245_v28 }
 0x4b7   : > { %v2682_v42 = vand.u32 2147483647, %v2678_v40  ;;  %v4801_v43 = vadd.f32 %v2666_v34, %v2592_v41  ;;  %v2680_v63 = vmax.f32 %v2678_v40, 0.0 }
 0x4b9   : > { %v2684_v44 = vsub.f32 0.0, %v2682_v42  ;;  %v2679_v45 = vsub.f32 %v3248_v35, %v4801_v43 }
 0x4bb   : > { %v2686_v46 = vmul.f32 1.442695, %v2684_v44  ;;  %v2683_v47 = vand.u32 2147483647, %v2679_v45  ;;  %v2681_v7 = vmax.f32 %v2679_v45, 0.0 }
 0x4bd   : > { %3785 = vpow2.f32 %v2686_v46  ;;  %v2685_v48 = vsub.f32 0.0, %v2683_v47 }
 0x4bf   : > { %v2688_v49 = vmul.f32 1.442695, %v2685_v48 }
 0x4c1   : > { %3787 = vpow2.f32 %v2688_v49 }
 0x4c7   : > { %v3786_v50 = vpop.eup %3785 }
 0x4c8   : > { %v2690_v51 = vadd.f32 1.0, %v3786_v50  ;;  %v2693_v54 = vmul.f32 -0.5, %v3786_v50  ;;  %v2696_v58 = vand.u32 2147483647, %v3786_v50 }
 0x4ca   : > { %3789 = vlog2.f32 %v2690_v51  ;;  %v2694_v56 = vadd.f32 1.0, %v2693_v54  ;;  %vm2697_vm3 = vcmp.lt.f32.partialorder %v2696_v58, 0.0004427343 }
 0x4cb   : > { %v3788_v52 = vpop.eup %3787 }
 0x4cc   : > { %v2699_v53 = vadd.f32 1.0, %v3788_v52  ;;  %v2702_v57 = vmul.f32 -0.5, %v3788_v52  ;;  %v2695_v61 = vmul.f32 %v3786_v50, %v2694_v56  ;;  %v2705_v0 = vand.u32 2147483647, %v3788_v52 }
 0x4ce   : > { %3791 = vlog2.f32 %v2699_v53  ;;  %v2703_v62 = vadd.f32 1.0, %v2702_v57  ;;  %vm2706_vm4 = vcmp.lt.f32.partialorder %v2705_v0, 0.0004427343 }
 0x4d0   : > { %v2704_v6 = vmul.f32 %v3788_v52, %v2703_v62 }
 0x4d4   : > { %v3790_v59 = vpop.eup %3789 }
 0x4d5   : > { %v2692_v60 = vmul.f32 0.6931472, %v3790_v59 }
 0x4d7   : > { %v2698_v2 = vsel %vm2697_vm3, %v2695_v61, %v2692_v60 }
 0x4d8   : > { %v3792_v3 = vpop.eup %3791  ;;  %v2708_v4 = vadd.f32 %v2698_v2, %v2680_v63 }
 0x4d9   : > { %v2701_v55 = vmul.f32 0.6931472, %v3792_v3 }
 0x4da   : > { %v2710_v1 = vsub.f32 %v3248_v35, %v2708_v4 }
 0x4db   : > { %v2707_v8 = vsel %vm2706_vm4, %v2704_v6, %v2701_v55 }
 0x4dc   : > { %v2718_v9 = vsub.f32 %v2710_v1, %v3249_v5  ;;  %v2709_v10 = vadd.f32 %v2707_v8, %v2681_v7 }
 0x4de   : > { %v2722_v11 = vand.u32 2147483647, %v2718_v9  ;;  %v2711_v12 = vsub.f32 %v3248_v35, %v2709_v10  ;;  %v2720_v33 = vmax.f32 %v2718_v9, 0.0 }
 0x4e0   : > { %v2724_v13 = vsub.f32 0.0, %v2722_v11  ;;  %v2719_v16 = vsub.f32 %v2711_v12, %v3249_v5 }
 0x4e2   : > { %v2726_v15 = vmul.f32 1.442695, %v2724_v13  ;;  %v2723_v19 = vand.u32 2147483647, %v2719_v16  ;;  %v2721_v42 = vmax.f32 %v2719_v16, 0.0 }
 0x4e4   : > { %3793 = vpow2.f32 %v2726_v15  ;;  %v2725_v17 = vsub.f32 0.0, %v2723_v19 }
 0x4e6   : > { %v2728_v18 = vmul.f32 1.442695, %v2725_v17 }
 0x4e8   : > { %3795 = vpow2.f32 %v2728_v18 }
 0x4ee   : > { %v3794_v21 = vpop.eup %3793 }
 0x4ef   : > { %v2730_v20 = vadd.f32 1.0, %v3794_v21  ;;  %v2733_v24 = vmul.f32 -0.5, %v3794_v21  ;;  %v2736_v27 = vand.u32 2147483647, %v3794_v21 }
 0x4f1   : > { %3797 = vlog2.f32 %v2730_v20  ;;  %v2734_v25 = vadd.f32 1.0, %v2733_v24  ;;  %vm2737_vm5 = vcmp.lt.f32.partialorder %v2736_v27, 0.0004427343 }
 0x4f2   : > { %v3796_v22 = vpop.eup %3795 }
 0x4f3   : > { %v2739_v23 = vadd.f32 1.0, %v3796_v22  ;;  %v2742_v26 = vmul.f32 -0.5, %v3796_v22  ;;  %v2735_v30 = vmul.f32 %v3794_v21, %v2734_v25  ;;  %v2745_v34 = vand.u32 2147483647, %v3796_v22 }
 0x4f5   : > { %3799 = vlog2.f32 %v2739_v23  ;;  %v2743_v32 = vadd.f32 1.0, %v2742_v26  ;;  %vm2746_vm8 = vcmp.lt.f32.partialorder %v2745_v34, 0.0004427343 }
 0x4f7   : > { %v2744_v40 = vmul.f32 %v3796_v22, %v2743_v32 }
 0x4fb   : > { %v3798_v28 = vpop.eup %3797 }
 0x4fc   : > { %v2732_v29 = vmul.f32 0.6931472, %v3798_v28 }
 0x4fe   : > { %v2738_v35 = vsel %vm2737_vm5, %v2735_v30, %v2732_v29 }
 0x4ff   : > { %v3800_v36 = vpop.eup %3799  ;;  %v2748_v37 = vadd.f32 %v2738_v35, %v2720_v33 }
 0x500   : > { %v2741_v39 = vmul.f32 0.6931472, %v3800_v36 }
 0x501   : > { %v2750_v41 = vadd.f32 %v3249_v5, %v2748_v37 }
 0x502   : > { %v2747_v14 = vsel %vm2746_vm8, %v2744_v40, %v2741_v39 }
 0x503   : > { %v2755_v44 = vsel %vm2754_vm6, %v4798_v38, %v2750_v41  ;;  %v2749_v45 = vadd.f32 %v2747_v14, %v2721_v42 }
 0x504   : > { %2758 = vst.msk [vmem:[%s687_s26] sm:$0xff] %vm2757_vm7, %v2755_v44 }
 0x505   : > { %v2751_v46 = vadd.f32 %v3249_v5, %v2749_v45 }
 0x507   : > { %v2756_v47 = vsel %vm2754_vm6, %v4801_v43, %v2751_v46 }
 0x508   : > { %2759 = vst.msk [vmem:[%s687_s26 + $0x8] sm:$0xff] %vm2757_vm7, %v2756_v47 }
 0x509 PF: > { %s33_s22 = sadd.s32 1, %s4073_s22   ;;  %s4887_s20 = sld [smem:[#allocation17_spill]] }
 0x50a   : > { %p30_p7 = scmp.ge.s32.totalorder %s33_s22, 5   ;;  %s4888_s19 = sld [smem:[#allocation19_spill]] }
 0x50b   : > { %s4889_s11 = sld [smem:[#allocation18_spill]]  ;;  %s4890_s17 = smov %s4057_s18 }
 0x50c   :  { %32 = sbr.rel (!%p30_p7) target bundleno = 19 (0x13), region = 182 }
 0x50f   : > { %s4891_s18 = smov %s4887_s20  ;;  %s4892_s20 = smov %s4069_s21 }
 0x511   : > { %s4893_s21 = smov %s4889_s11 }
 0x513   :  { %2790 = vsyncpa [#allocation3], 1 }
 0x514   :  { %2792 = vsyncpa [#allocation3 + $0x1], 1 }
 0x515   :  { %2793 = vsyncpa [#allocation5], 1 }
 0x516   :  { %2795 = vsyncpa [#allocation5 + $0x1], 1 }
 0x517   :  { %2796 = vsyncpa [#allocation8], 1 }
 0x518   :  { %2798 = vsyncpa [#allocation8 + $0x1], 1 }
 0x519   :  { %2799 = vsyncpa [#allocation11], 1 }
 0x51a   :  { %2801 = vsyncpa [#allocation11 + $0x1], 1 }

</bundles_post_ra>
